<compile_context>
chip_gen: v5e
topology: v5e:2x2
jax: 0.10.0
libtpu: 0.0.40
codegen_flags: <defaults>
</compile_context>

<pallas_src>
import functools

import jax
import jax.numpy as jnp
from jax import lax
from jax.experimental import pallas as pl
from jax.experimental.pallas import tpu as pltpu


def _round_up(v, m):
    return ((v + m - 1) // m) * m


def _adapter_kernel(x_ref, w1_ref, b1_ref, w2_ref, b2_ref, o_ref, *, skip_connect):
    """One row-tile of the adapter MLP (+ optional skip connection).

    x_ref : (TM, D)   input tokens (compute dtype)
    w1_ref: (D, Hp)   first linear weight laid out for x @ W (torch W1.T), Hp = H padded to 128
    b1_ref: (1, Hp)   first linear bias (zero-padded)
    w2_ref: (Hp, D)   second linear weight (torch W2.T), padded rows are zero
    b2_ref: (1, D)    second linear bias
    o_ref : (TM, D)   output = x + MLP(x)
    """
    x = x_ref[...]

    # Linear 1 on the MXU, f32 accumulation, bias add in f32.
    h = jnp.dot(x, w1_ref[...], preferred_element_type=jnp.float32) + b1_ref[...]

    # Exact (erf) GELU in f32 to match torch.nn.GELU default.
    h = 0.5 * h * (1.0 + lax.erf(h * jnp.float32(0.7071067811865476)))

    # Linear 2 on the MXU (hidden cast back to weight dtype), f32 accumulation.
    y = jnp.dot(h.astype(w2_ref.dtype), w2_ref[...],
                preferred_element_type=jnp.float32) + b2_ref[...]

    if skip_connect:
        y = y + x.astype(jnp.float32)
    o_ref[...] = y.astype(o_ref.dtype)


def _vmem_capacity_bytes():
    """Per-core VMEM capacity of the current chip (conservative fallback)."""
    try:
        return int(pltpu.get_tpu_info().vmem_capacity_bytes)
    except Exception:
        return 64 * 1024 * 1024   # v7x per-TensorCore VMEM (smallest in the fleet)


def _choose_tm(n_rows, sublane):
    """Row-tile size: ~512 rows, >= 8 grid steps when there is enough work."""
    if n_rows <= 1024:
        # One or two steps; nothing worth pipelining, just cover the rows.
        return min(512, _round_up(max(n_rows, sublane), sublane))
    tm = min(512, _round_up(pl.cdiv(n_rows, 8), sublane))
    return max(tm, sublane)


def _pallas_adapter(x2d, w1, b1_2d, w2, b2_2d, *, tm, vmem_limit, skip_connect):
    n, d = x2d.shape
    hp = w1.shape[1]
    grid = pl.cdiv(n, tm)   # ragged final block: Pallas masks the OOB rows on writeback

    itemsize = jnp.dtype(x2d.dtype).itemsize
    cost = pl.CostEstimate(
        flops=4 * n * d * hp,                               # two matmuls, 2 flops/MAC each
        transcendentals=n * hp,                             # erf per hidden activation
        bytes_accessed=2 * n * d * itemsize
        + (d * hp + hp + hp * d + d) * jnp.dtype(w1.dtype).itemsize,
    )

    kernel = functools.partial(_adapter_kernel, skip_connect=skip_connect)

    return pl.pallas_call(
        kernel,
        out_shape=jax.ShapeDtypeStruct((n, d), x2d.dtype),
        grid_spec=pltpu.PrefetchScalarGridSpec(
            num_scalar_prefetch=0,
            grid=(grid,),
            in_specs=[
                pl.BlockSpec((tm, d), lambda i: (i, 0)),    # streamed x row tile
                pl.BlockSpec((d, hp), lambda i: (0, 0)),    # W1 (constant index -> no re-DMA)
                pl.BlockSpec((1, hp), lambda i: (0, 0)),    # b1
                pl.BlockSpec((hp, d), lambda i: (0, 0)),    # W2
                pl.BlockSpec((1, d), lambda i: (0, 0)),     # b2
            ],
            out_specs=pl.BlockSpec((tm, d), lambda i: (i, 0)),
        ),
        compiler_params=pltpu.CompilerParams(
            dimension_semantics=("parallel",),
            vmem_limit_bytes=int(vmem_limit),
        ),
        cost_estimate=cost,
    )(x2d, w1, b1_2d, w2, b2_2d)


def adapter_forward(x, w1, b1, w2, b2, *, tm=None, compute_dtype=None,
                    skip_connect=True):
    """Adapter MLP (+ skip) for channels-last x of shape [..., D].

    w1: (D, H) = torch W1.T, b1: (H,), w2: (H, D) = torch W2.T, b2: (D,).
    compute_dtype: optional cast (e.g. jnp.bfloat16) to halve HBM traffic;
      accumulation stays f32 inside the kernel, output is in compute_dtype.
    """
    d = x.shape[-1]
    hidden = w1.shape[1]
    cdt = jnp.dtype(compute_dtype) if compute_dtype is not None else jnp.dtype(x.dtype)

    if d < 128:
        # Lane-sparse MXU + per-step grid overhead: the plain XLA fusion wins here.
        xc = x.astype(cdt)
        h = xc @ w1.astype(cdt) + b1.astype(cdt)
        h = jax.nn.gelu(h, approximate=False)
        y = h @ w2.astype(cdt) + b2.astype(cdt)
        return (xc + y) if skip_connect else y

    orig_shape = x.shape
    x2d = x.reshape(-1, d).astype(cdt)
    n = x2d.shape[0]

    # Zero-pad the hidden dim to a lane multiple (numerically exact:
    # GELU(0) = 0 and the padded W2 rows are zero).
    hp = _round_up(hidden, 128)
    w1p = w1.astype(cdt)
    b1p = b1.astype(cdt)
    w2p = w2.astype(cdt)
    if hp != hidden:
        w1p = jnp.pad(w1p, ((0, 0), (0, hp - hidden)))
        b1p = jnp.pad(b1p, ((0, hp - hidden),))
        w2p = jnp.pad(w2p, ((0, hp - hidden), (0, 0)))
    b1_2d = b1p.reshape(1, hp)
    b2_2d = b2.astype(cdt).reshape(1, d)

    itemsize = cdt.itemsize
    sublane = {4: 8, 2: 16, 1: 32}.get(itemsize, 8)
    if tm is None:
        tm = _choose_tm(n, sublane)
    else:
        tm = max(sublane, _round_up(int(tm), sublane))

    capacity = _vmem_capacity_bytes()
    need = (4 * tm * d * itemsize                           # x + out tiles (double-buffered)
            + 2 * (d * hp + hp + hp * d + d) * itemsize     # weights/biases (double-buffered)
            + 4 * tm * (hp + d)                             # f32 intermediates
            + (16 << 20))                                   # Mosaic scratch / semaphore margin
    vmem_limit = max(32 << 20, min(need, int(capacity * 0.8)))

    out = _pallas_adapter(x2d, w1p, b1_2d, w2p, b2_2d, tm=tm,
                          vmem_limit=vmem_limit, skip_connect=skip_connect)
    return out.reshape(orig_shape)


def _reference(x, w1, b1, w2, b2):
    h = x @ w1 + b1
    h = jax.nn.gelu(h, approximate=False)
    return x + (h @ w2 + b2)


if __name__ == "__main__":
    key = jax.random.PRNGKey(0)

    def make_params(k, d, hidden):
        k1, k2, k3, k4 = jax.random.split(k, 4)
        bound1 = 1.0 / (d ** 0.5)
        bound2 = 1.0 / (hidden ** 0.5)
        w1 = jax.random.uniform(k1, (d, hidden), minval=-bound1, maxval=bound1,
                                dtype=jnp.float32)   # = torch W1.T, laid out for x @ W
        b1 = jax.random.uniform(k2, (hidden,), minval=-bound1, maxval=bound1,
                                dtype=jnp.float32)
        w2 = jax.random.uniform(k3, (hidden, d), minval=-bound2, maxval=bound2,
                                dtype=jnp.float32)   # = torch W2.T
        b2 = jax.random.uniform(k4, (d,), minval=-bound2, maxval=bound2,
                                dtype=jnp.float32)
        return w1, b1, w2, b2

    kx1, kp1, kx2, kp2 = jax.random.split(key, 4)

    # --- Case A: Pallas path. D=128 (hidden=32, zero-padded to 128), ragged row count.
    B, Hs, Ws, D = 2, 7, 9, 128            # N = 126 rows -> exercises masked final tile
    Hd = int(D * 0.25)
    x = jax.random.normal(kx1, (B, Hs, Ws, D), dtype=jnp.float32)
    w1, b1, w2, b2 = make_params(kp1, D, Hd)

    out = jax.block_until_ready(adapter_forward(x, w1, b1, w2, b2))
    ref = _reference(x.reshape(-1, D), w1, b1, w2, b2).reshape(x.shape)
    assert out.shape == x.shape and out.dtype == x.dtype
    assert jnp.allclose(out, ref, atol=3e-3, rtol=3e-3), "f32 Pallas path mismatch"

    # --- Case B: same data through the bf16 (halved HBM traffic) path.
    out_bf16 = jax.block_until_ready(
        adapter_forward(x, w1, b1, w2, b2, compute_dtype=jnp.bfloat16))
    assert out_bf16.dtype == jnp.bfloat16
    assert jnp.allclose(out_bf16.astype(jnp.float32), ref, atol=3e-2, rtol=3e-2), \
        "bf16 Pallas path mismatch"

    # --- Case C: small-D adapter stage (D=32, hidden=8) -> XLA-fusion fallback path.
    Ds, Hds = 32, 8
    xs = jax.random.normal(kx2, (2, 8, 8, Ds), dtype=jnp.float32)
    w1s, b1s, w2s, b2s = make_params(kp2, Ds, Hds)
    out_s = jax.block_until_ready(adapter_forward(xs, w1s, b1s, w2s, b2s))
    ref_s = _reference(xs.reshape(-1, Ds), w1s, b1s, w2s, b2s).reshape(xs.shape)
    assert jnp.allclose(out_s, ref_s, atol=1e-5, rtol=1e-5), "small-D fallback mismatch"

    print("KERNEL_OK")
</pallas_src>

<mosaic_0001>
module attributes {stable_mosaic.version = 11 : i64} {
  func.func @_adapter_kernel(%arg0: i32, %arg1: memref<128x128xf32, #tpu.memory_space<vmem>>, %arg2: memref<128x128xf32, #tpu.memory_space<vmem>>, %arg3: memref<1x128xf32, #tpu.memory_space<vmem>>, %arg4: memref<128x128xf32, #tpu.memory_space<vmem>>, %arg5: memref<1x128xf32, #tpu.memory_space<vmem>>, %arg6: memref<128x128xf32, #tpu.memory_space<vmem>>) attributes {dimension_semantics = [#tpu.dimension_semantics<parallel>], iteration_bounds = array<i64: 1>, scalar_prefetch = 0 : i64, scratch_operands = 0 : i64, tpu.core_type = #tpu.core_type<tc>, window_params = [{transform_indices = @transform_0, window_bounds = array<i64: 128, 128>}, {pipeline_mode = #tpu.pipeline_mode<synchronous>, transform_indices = @transform_1, window_bounds = array<i64: 128, 128>}, {pipeline_mode = #tpu.pipeline_mode<synchronous>, transform_indices = @transform_2, window_bounds = array<i64: 1, 128>}, {pipeline_mode = #tpu.pipeline_mode<synchronous>, transform_indices = @transform_3, window_bounds = array<i64: 128, 128>}, {pipeline_mode = #tpu.pipeline_mode<synchronous>, transform_indices = @transform_4, window_bounds = array<i64: 1, 128>}, {transform_indices = @transform_5, window_bounds = array<i64: 128, 128>}]} {
    %c0 = arith.constant 0 : index
    %c0_0 = arith.constant 0 : index
    %0 = vector.load %arg1[%c0, %c0_0] : memref<128x128xf32, #tpu.memory_space<vmem>>, vector<128x128xf32>
    %c0_1 = arith.constant 0 : index
    %c0_2 = arith.constant 0 : index
    %1 = vector.load %arg2[%c0_1, %c0_2] : memref<128x128xf32, #tpu.memory_space<vmem>>, vector<128x128xf32>
    %cst = arith.constant dense<0.000000e+00> : vector<128x128xf32>
    %2 = tpu.matmul %0, %1, %cst {dimension_numbers = #tpu.dot_dimension_numbers<[1], [0], [0], [1], [0, 0, 1, 1], [], []>} : vector<128x128xf32>, vector<128x128xf32>, vector<128x128xf32> -> vector<128x128xf32>
    %c0_3 = arith.constant 0 : index
    %c0_4 = arith.constant 0 : index
    %3 = vector.load %arg3[%c0_3, %c0_4] : memref<1x128xf32, #tpu.memory_space<vmem>>, vector<1x128xf32>
    %4 = vector.broadcast %3 : vector<1x128xf32> to vector<128x128xf32>
    %5 = arith.addf %2, %4 : vector<128x128xf32>
    %cst_5 = arith.constant 5.000000e-01 : f32
    %6 = vector.broadcast %cst_5 : f32 to vector<128x128xf32>
    %7 = arith.mulf %6, %5 : vector<128x128xf32>
    %cst_6 = arith.constant 0.707106769 : f32
    %8 = vector.broadcast %cst_6 : f32 to vector<128x128xf32>
    %9 = arith.mulf %5, %8 : vector<128x128xf32>
    %10 = math.erf %9 : vector<128x128xf32>
    %cst_7 = arith.constant 1.000000e+00 : f32
    %11 = vector.broadcast %cst_7 : f32 to vector<128x128xf32>
    %12 = arith.addf %11, %10 : vector<128x128xf32>
    %13 = arith.mulf %7, %12 : vector<128x128xf32>
    %c0_8 = arith.constant 0 : index
    %c0_9 = arith.constant 0 : index
    %14 = vector.load %arg4[%c0_8, %c0_9] : memref<128x128xf32, #tpu.memory_space<vmem>>, vector<128x128xf32>
    %cst_10 = arith.constant dense<0.000000e+00> : vector<128x128xf32>
    %15 = tpu.matmul %13, %14, %cst_10 {dimension_numbers = #tpu.dot_dimension_numbers<[1], [0], [0], [1], [0, 0, 1, 1], [], []>} : vector<128x128xf32>, vector<128x128xf32>, vector<128x128xf32> -> vector<128x128xf32>
    %c0_11 = arith.constant 0 : index
    %c0_12 = arith.constant 0 : index
    %16 = vector.load %arg5[%c0_11, %c0_12] : memref<1x128xf32, #tpu.memory_space<vmem>>, vector<1x128xf32>
    %17 = vector.broadcast %16 : vector<1x128xf32> to vector<128x128xf32>
    %18 = arith.addf %15, %17 : vector<128x128xf32>
    %19 = arith.addf %18, %0 : vector<128x128xf32>
    %c0_13 = arith.constant 0 : index
    %c0_14 = arith.constant 0 : index
    %20 = vector.load %arg6[%c0_13, %c0_14] : memref<128x128xf32, #tpu.memory_space<vmem>>, vector<128x128xf32>
    tpu.vector_store %arg6[%c0_13, %c0_14], %19 {strides = array<i32>} : memref<128x128xf32, #tpu.memory_space<vmem>>, vector<128x128xf32>,
    return
  }
  func.func @transform_0(%arg0: i32) -> (i32, i32) {
    %c0_i32 = arith.constant 0 : i32
    %c0_i32_0 = arith.constant 0 : i32
    return %arg0, %c0_i32 : i32, i32
  }
  func.func @transform_1(%arg0: i32) -> (i32, i32) {
    %c0_i32 = arith.constant 0 : i32
    %c0_i32_0 = arith.constant 0 : i32
    %c0_i32_1 = arith.constant 0 : i32
    return %c0_i32, %c0_i32_0 : i32, i32
  }
  func.func @transform_2(%arg0: i32) -> (i32, i32) {
    %c0_i32 = arith.constant 0 : i32
    %c0_i32_0 = arith.constant 0 : i32
    %c0_i32_1 = arith.constant 0 : i32
    return %c0_i32, %c0_i32_0 : i32, i32
  }
  func.func @transform_3(%arg0: i32) -> (i32, i32) {
    %c0_i32 = arith.constant 0 : i32
    %c0_i32_0 = arith.constant 0 : i32
    %c0_i32_1 = arith.constant 0 : i32
    return %c0_i32, %c0_i32_0 : i32, i32
  }
  func.func @transform_4(%arg0: i32) -> (i32, i32) {
    %c0_i32 = arith.constant 0 : i32
    %c0_i32_0 = arith.constant 0 : i32
    %c0_i32_1 = arith.constant 0 : i32
    return %c0_i32, %c0_i32_0 : i32, i32
  }
  func.func @transform_5(%arg0: i32) -> (i32, i32) {
    %c0_i32 = arith.constant 0 : i32
    %c0_i32_0 = arith.constant 0 : i32
    return %arg0, %c0_i32 : i32, i32
  }
}

</mosaic_0001>

<bundles_post_ra>
// kernel: tpu_custom_call.1
= control target key start
LH: loop header
LB: loop body
LE: loop exit
PB: predicated region body
PF: predicated region fallthrough
CT: control target
= control target key end

     0   :  { %10 = vsyncpa [#allocation3], 0  ;;  %s1942_s0 = inlined_call_operand.hbm [shape: f32[126,128], index: 0, kind: input, shape index: {}]   ;;  %s1943_s1 = inlined_call_operand.hbm [shape: f32[128,128], index: 1, kind: input, shape index: {}]   ;;  %s1944_s2 = inlined_call_operand.vmem [shape: f32[1,128], index: 2, kind: input, shape index: {}]   ;;  %s1945_s3 = inlined_call_operand.hbm [shape: f32[128,128], index: 3, kind: input, shape index: {}]   ;;  %s1946_s4 = inlined_call_operand.vmem [shape: f32[1,128], index: 4, kind: input, shape index: {}]   ;;  %s1947_s5 = inlined_call_operand.hbm [shape: f32[126,128], index: 5, kind: output, shape index: {}]  }
   0x1   :  { %11 = vsyncpa [#allocation6], 0 }
   0x2   :  { %12 = vsyncpa [#allocation4], 0  ;;  %s30_s20 = sshll.u32 %s1943_s1, 4  ;;  %s1216_s21 = smov [#allocation5]   ;;  %s31_s20 = int_to_ptr.hbm [resolvable:$true] %s30_s20 }
   0x3   :  { %s32_s22 = sshll.u32 %s1216_s21, 4  ;;  %s17_s25 = sshll.u32 %s1942_s0, 4  ;;  %s33_s22 = int_to_ptr.vmem [resolvable:$true] %s32_s22  ;;  %s18_s25 = int_to_ptr.hbm [resolvable:$true] %s17_s25 }
   0x4   :  { %s1217_s26 = smov 128   ;;  %s1218_s27 = smov 8  }
   0x5   :  { %38 = dma.hbm_to_vmem [thread:$0]  %s31_s20, 2048, %s33_s22, [#allocation6], %s1217_s26, %s1217_s26, %s1218_s27  }
   0x6   :  { %s1219_s28 = smov [#allocation2]   ;;  %s45_s1 = sshll.u32 %s1945_s3, 4  ;;  %s46_s1 = int_to_ptr.hbm [resolvable:$true] %s45_s1 }
   0x7   :  { %s19_s29 = sshll.u32 %s1219_s28, 4  ;;  %s1220_s0 = smov [#allocation7]   ;;  %s20_s29 = int_to_ptr.vmem [resolvable:$true] %s19_s29 }
   0x8   :  { %25 = dma.hbm_to_vmem [thread:$0]  %s18_s25, 2048, %s20_s29, [#allocation3], %s1217_s26, %s1217_s26, %s1218_s27  }
   0x9   :  { %s47_s7 = sshll.u32 %s1220_s0, 4  ;;  %s48_s7 = int_to_ptr.vmem [resolvable:$true] %s47_s7 }
   0xa   :  { %53 = dma.hbm_to_vmem [thread:$0]  %s46_s1, 2048, %s48_s7, [#allocation6], %s1217_s26, %s1217_s26, %s1218_s27  }
   0xb   :  { %1210 = dma.done.wait [#allocation3], 2048  }
   0xc   :  { %1211 = vsyncadd [#allocation3], 4294965248 }
   0xd   :  { %1212 = dma.done.wait [#allocation6], 4096  }
   0xe   :  { %1213 = vsyncadd [#allocation6], 4294963200  ;;  %v99_v0 = vld [vmem:[#allocation5 + $0x78] sm:$0xff]  ;;  %v98_v1 = vld [vmem:[#allocation5 + $0x70] sm:$0xff]  ;;  %s996_s13 = sshll.u32 %s1947_s5, 4  ;;  %s997_s13 = int_to_ptr.hbm [resolvable:$true] %s996_s13 }
   0xf   :  { %104 = vmatpush.msra.mxu0 %v99_v0  ;;  %1026 = vmatpush.msra.mxu2 %v99_v0  ;;  %v97_v2 = vld [vmem:[#allocation5 + $0x68] sm:$0xff]  ;;  %v96_v3 = vld [vmem:[#allocation5 + $0x60] sm:$0xff]  ;;  %v95_v4 = vld [vmem:[#allocation5 + $0x58] sm:$0xff] }
  0x10   :  { %v94_v5 = vld [vmem:[#allocation5 + $0x50] sm:$0xff]  ;;  %v93_v6 = vld [vmem:[#allocation5 + $0x48] sm:$0xff]  ;;  %v92_v7 = vld [vmem:[#allocation5 + $0x40] sm:$0xff] }
  0x11   :  { %105 = vmatpush.msra.mxu0 %v98_v1  ;;  %1027 = vmatpush.msra.mxu2 %v98_v1  ;;  %v91_v8 = vld [vmem:[#allocation5 + $0x38] sm:$0xff]  ;;  %v90_v9 = vld [vmem:[#allocation5 + $0x30] sm:$0xff]  ;;  %v89_v10 = vld [vmem:[#allocation5 + $0x28] sm:$0xff] }
  0x12   :  { %v88_v11 = vld [vmem:[#allocation5 + $0x20] sm:$0xff]  ;;  %v87_v12 = vld [vmem:[#allocation5 + $0x18] sm:$0xff]  ;;  %v86_v13 = vld [vmem:[#allocation5 + $0x10] sm:$0xff] }
  0x13   :  { %106 = vmatpush.msra.mxu0 %v97_v2  ;;  %1028 = vmatpush.msra.mxu2 %v97_v2  ;;  %v85_v14 = vld [vmem:[#allocation5 + $0x8] sm:$0xff]  ;;  %v84_v15 = vld [vmem:[#allocation5] sm:$0xff]  ;;  %v70_v20 = vld [vmem:[#allocation2 + $0x10] sm:$0xff] }
  0x14   :  { %v68_v16 = vld [vmem:[#allocation2] sm:$0xff]  ;;  %v69_v18 = vld [vmem:[#allocation2 + $0x8] sm:$0xff]  ;;  %v78_v21 = vld [vmem:[#allocation2 + $0x50] sm:$0xff] }
  0x15   :  { %107 = vmatpush.msra.mxu0 %v96_v3  ;;  %1029 = vmatpush.msra.mxu2 %v96_v3  ;;  %v76_v17 = vld [vmem:[#allocation2 + $0x40] sm:$0xff]  ;;  %v77_v19 = vld [vmem:[#allocation2 + $0x48] sm:$0xff]  ;;  %v71_v22 = vld [vmem:[#allocation2 + $0x18] sm:$0xff] }
  0x16   :  { %v79_v23 = vld [vmem:[#allocation2 + $0x58] sm:$0xff]  ;;  %v72_v24 = vld [vmem:[#allocation2 + $0x20] sm:$0xff]  ;;  %v73_v26 = vld [vmem:[#allocation2 + $0x28] sm:$0xff] }
  0x17   :  { %108 = vmatpush.msra.mxu0 %v95_v4  ;;  %1030 = vmatpush.msra.mxu2 %v95_v4  ;;  %v80_v25 = vld [vmem:[#allocation2 + $0x60] sm:$0xff]  ;;  %v81_v27 = vld [vmem:[#allocation2 + $0x68] sm:$0xff]  ;;  %v74_v28 = vld [vmem:[#allocation2 + $0x30] sm:$0xff] }
  0x18   :  { %v82_v29 = vld [vmem:[#allocation2 + $0x70] sm:$0xff]  ;;  %v75_v30 = vld [vmem:[#allocation2 + $0x38] sm:$0xff]  ;;  %v886_v34 = vld [vmem:[#allocation7 + $0x68] sm:$0xff] }
  0x19   :  { %109 = vmatpush.msra.mxu0 %v94_v5  ;;  %1031 = vmatpush.msra.mxu2 %v94_v5  ;;  %v83_v31 = vld [vmem:[#allocation2 + $0x78] sm:$0xff]  ;;  %v887_v33 = vld [vmem:[#allocation7 + $0x70] sm:$0xff]  ;;  %v1273_v35 = vld [vmem:[%s1944_s2] ss:$0 sm:$0xff] }
  0x1a   :  { %v888_v32 = vld [vmem:[#allocation7 + $0x78] sm:$0xff]  ;;  %v885_v36 = vld [vmem:[#allocation7 + $0x60] sm:$0xff]  ;;  %v883_v40 = vld [vmem:[#allocation7 + $0x50] sm:$0xff] }
  0x1b   :  { %110 = vmatpush.msra.mxu0 %v93_v6  ;;  %1032 = vmatpush.msra.mxu2 %v93_v6  ;;  %v884_v38 = vld [vmem:[#allocation7 + $0x58] sm:$0xff]  ;;  %v882_v42 = vld [vmem:[#allocation7 + $0x48] sm:$0xff]  ;;  %v881_v45 = vld [vmem:[#allocation7 + $0x40] sm:$0xff] }
  0x1c   :  { %893 = vmatpush.msra.mxu1 %v888_v32  ;;  %1042 = vmatpush.msra.mxu3 %v888_v32  ;;  %v880_v49 = vld [vmem:[#allocation7 + $0x38] sm:$0xff]  ;;  %v879_v56 = vld [vmem:[#allocation7 + $0x30] sm:$0xff]  ;;  %v878_v60 = vld [vmem:[#allocation7 + $0x28] sm:$0xff] }
  0x1d   :  { %111 = vmatpush.msra.mxu0 %v92_v7  ;;  %1033 = vmatpush.msra.mxu2 %v92_v7  ;;  %v877_v3 = vld [vmem:[#allocation7 + $0x20] sm:$0xff]  ;;  %v876_v7 = vld [vmem:[#allocation7 + $0x18] sm:$0xff] }
  0x1e   :  { %894 = vmatpush.msra.mxu1 %v887_v33  ;;  %1043 = vmatpush.msra.mxu3 %v887_v33 }
  0x1f   :  { %112 = vmatpush.msra.mxu0 %v91_v8  ;;  %1034 = vmatpush.msra.mxu2 %v91_v8 }
  0x20   :  { %895 = vmatpush.msra.mxu1 %v886_v34  ;;  %1044 = vmatpush.msra.mxu3 %v886_v34 }
  0x21   :  { %113 = vmatpush.msra.mxu0 %v90_v9  ;;  %1035 = vmatpush.msra.mxu2 %v90_v9 }
  0x22   :  { %896 = vmatpush.msra.mxu1 %v885_v36  ;;  %1045 = vmatpush.msra.mxu3 %v885_v36 }
  0x23   :  { %114 = vmatpush.msra.mxu0 %v89_v10  ;;  %1036 = vmatpush.msra.mxu2 %v89_v10 }
  0x24   :  { %897 = vmatpush.msra.mxu1 %v884_v38  ;;  %1046 = vmatpush.msra.mxu3 %v884_v38 }
  0x25   :  { %115 = vmatpush.msra.mxu0 %v88_v11  ;;  %1037 = vmatpush.msra.mxu2 %v88_v11 }
  0x26   :  { %898 = vmatpush.msra.mxu1 %v883_v40  ;;  %1047 = vmatpush.msra.mxu3 %v883_v40 }
  0x27   :  { %116 = vmatpush.msra.mxu0 %v87_v12  ;;  %1038 = vmatpush.msra.mxu2 %v87_v12 }
  0x28   :  { %899 = vmatpush.msra.mxu1 %v882_v42  ;;  %1048 = vmatpush.msra.mxu3 %v882_v42 }
  0x29   :  { %117 = vmatpush.msra.mxu0 %v86_v13  ;;  %1039 = vmatpush.msra.mxu2 %v86_v13  ;;  %v875_v13 = vld [vmem:[#allocation7 + $0x10] sm:$0xff] }
  0x2a   :  { %900 = vmatpush.msra.mxu1 %v881_v45  ;;  %1049 = vmatpush.msra.mxu3 %v881_v45 }
  0x2b   :  { %118 = vmatpush.msra.mxu0 %v85_v14  ;;  %1040 = vmatpush.msra.mxu2 %v85_v14 }
  0x2c   :  { %901 = vmatpush.msra.mxu1 %v880_v49  ;;  %1050 = vmatpush.msra.mxu3 %v880_v49 }
  0x2d   :  { %119 = vmatpush.msra.mxu0 %v84_v15  ;;  %1041 = vmatpush.msra.mxu2 %v84_v15 }
  0x2e   :  { %120 = vmatmul.f32.vlgmr.msra.gmra.mxu0 %v68_v16  ;;  %144 = vmatmul.f32.vlgmr.msra.gmra.mxu2 %v76_v17  ;;  %v874_v17 = vld [vmem:[#allocation7 + $0x8] sm:$0xff] }
  0x2f   :  { %902 = vmatpush.msra.mxu1 %v879_v56  ;;  %1051 = vmatpush.msra.mxu3 %v879_v56 }
  0x31   :  { %903 = vmatpush.msra.mxu1 %v878_v60  ;;  %1052 = vmatpush.msra.mxu3 %v878_v60 }
  0x33   :  { %904 = vmatpush.msra.mxu1 %v877_v3  ;;  %1053 = vmatpush.msra.mxu3 %v877_v3 }
  0x35   :  { %905 = vmatpush.msra.mxu1 %v876_v7  ;;  %1054 = vmatpush.msra.mxu3 %v876_v7 }
  0x36   :  { %123 = vmatmul.f32.gmra.mxu0 %v69_v18  ;;  %147 = vmatmul.f32.gmra.mxu2 %v77_v19 }
  0x37   :  { %906 = vmatpush.msra.mxu1 %v875_v13  ;;  %1055 = vmatpush.msra.mxu3 %v875_v13 }
  0x39   :  { %907 = vmatpush.msra.mxu1 %v874_v17  ;;  %1056 = vmatpush.msra.mxu3 %v874_v17 }
  0x3e   :  { %126 = vmatmul.f32.gmra.mxu0 %v70_v20  ;;  %150 = vmatmul.f32.gmra.mxu2 %v78_v21 }
  0x46   :  { %129 = vmatmul.f32.gmra.mxu0 %v71_v22  ;;  %153 = vmatmul.f32.gmra.mxu2 %v79_v23 }
  0x4e   :  { %132 = vmatmul.f32.gmra.mxu0 %v72_v24  ;;  %156 = vmatmul.f32.gmra.mxu2 %v80_v25  ;;  %v873_v25 = vld [vmem:[#allocation7] sm:$0xff] }
  0x4f   :  { %908 = vmatpush.msra.mxu1 %v873_v25  ;;  %1057 = vmatpush.msra.mxu3 %v873_v25 }
  0x56   :  { %135 = vmatmul.f32.gmra.mxu0 %v73_v26  ;;  %159 = vmatmul.f32.gmra.mxu2 %v81_v27 }
  0x5e   :  { %138 = vmatmul.f32.gmra.mxu0 %v74_v28  ;;  %162 = vmatmul.f32.gmra.mxu2 %v82_v29 }
  0x66   :  { %141 = vmatmul.f32.gmra.mxu0 %v75_v30  ;;  %165 = vmatmul.f32.gmra.mxu2 %v83_v31 }
  0xab   :  { %v121_v37 = vpop.f32.mrf.mxu0 }
  0xac   :  { %v1276_v39 = vadd.f32 %v1273_v35, %v121_v37 }
  0xae   :  { %v1279_v41 = vmul.f32 0.70710677, %v1276_v39  ;;  %v1382_v13 = vmul.f32 0.5, %v1276_v39 }
  0xb0   :  { %v201_v43 = vmul.f32 %v1279_v41, %v1279_v41 }
  0xb1   :  { %v145_v44 = vpop.f32.mrf.mxu2 }
  0xb2   :  { %v1283_v46 = vmin.f32 %v201_v43, 16.0  ;;  %v1286_v47 = vadd.f32 %v1273_v35, %v145_v44 }
  0xb3   :  { %v124_v48 = vpop.f32.mrf.mxu0 }
  0xb4   :  { %v1289_v50 = vmul.f32 0.70710677, %v1286_v47  ;;  %v1292_v51 = vadd.f32 %v1273_v35, %v124_v48  ;;  %v203_v52 = vmul.f32 2.1237322e-06, %v1283_v46  ;;  %v214_v53 = vmul.f32 3.8918573e-05, %v1283_v46 }
  0xb6   :  { %v521_v54 = vmul.f32 %v1289_v50, %v1289_v50  ;;  %v1299_v55 = vmul.f32 0.70710677, %v1292_v51  ;;  %v215_v57 = vadd.f32 0.001143296, %v214_v53  ;;  %v204_v61 = vadd.f32 0.00028619796, %v203_v52 }
  0xb8   :  { %v1301_v58 = vmin.f32 %v521_v54, 16.0  ;;  %v241_v59 = vmul.f32 %v1299_v55, %v1299_v55  ;;  %v216_v63 = vmul.f32 %v215_v57, %v1283_v46  ;;  %v205_v8 = vmul.f32 %v204_v61, %v1283_v46 }
  0xb9   :  { %v148_v62 = vpop.f32.mrf.mxu2 }
  0xba   :  { %v523_v0 = vmul.f32 2.1237322e-06, %v1301_v58  ;;  %v1307_v1 = vmin.f32 %v241_v59, 16.0  ;;  %v1310_v2 = vadd.f32 %v1273_v35, %v148_v62  ;;  %v217_v5 = vadd.f32 0.014752088, %v216_v63 }
  0xbb   :  { %v127_v4 = vpop.f32.mrf.mxu0  ;;  %v206_v19 = vadd.f32 0.0036580483, %v205_v8 }
  0xbc   :  { %v243_v6 = vmul.f32 2.1237322e-06, %v1307_v1  ;;  %v1315_v9 = vmul.f32 0.70710677, %v1310_v2  ;;  %v1318_v10 = vadd.f32 %v1273_v35, %v127_v4  ;;  %v218_v11 = vmul.f32 %v217_v5, %v1283_v46 }
  0xbd   :  { %v524_v12 = vadd.f32 0.00028619796, %v523_v0  ;;  %v207_v31 = vmul.f32 %v206_v19, %v1283_v46 }
  0xbe   :  { %v244_v14 = vadd.f32 0.00028619796, %v243_v6  ;;  %v561_v15 = vmul.f32 %v1315_v9, %v1315_v9  ;;  %v1324_v16 = vmul.f32 0.70710677, %v1318_v10  ;;  %v219_v18 = vadd.f32 0.112945676, %v218_v11 }
  0xbf   :  { %v525_v23 = vmul.f32 %v524_v12, %v1301_v58  ;;  %v208_v44 = vadd.f32 0.05243302, %v207_v31 }
  0xc0   :  { %v1326_v20 = vmin.f32 %v561_v15, 16.0  ;;  %v281_v21 = vmul.f32 %v1324_v16, %v1324_v16  ;;  %v245_v26 = vmul.f32 %v244_v14, %v1307_v1  ;;  %v220_v30 = vmul.f32 %v219_v18, %v1283_v46 }
  0xc1   :  { %v151_v22 = vpop.f32.mrf.mxu2  ;;  %v526_v34 = vadd.f32 0.0036580483, %v525_v23  ;;  %v209_v61 = vmul.f32 %v208_v44, %v1283_v46  ;;  %v1394_v23 = vmul.f32 0.5, %v1286_v47  ;;  %v1409_v47 = vmul.f32 0.5, %v1310_v2 }
  0xc2   :  { %v1332_v24 = vadd.f32 %v1273_v35, %v151_v22  ;;  %v563_v27 = vmul.f32 2.1237322e-06, %v1326_v20  ;;  %v1336_v29 = vmin.f32 %v281_v21, 16.0  ;;  %v246_v36 = vadd.f32 0.0036580483, %v245_v26 }
  0xc3   :  { %v130_v28 = vpop.f32.mrf.mxu0  ;;  %v221_v43 = vadd.f32 0.4994258, %v220_v30  ;;  %v527_v48 = vmul.f32 %v526_v34, %v1301_v58  ;;  %v210_v14 = vadd.f32 0.18741608, %v209_v61 }
  0xc4   :  { %v1341_v32 = vmul.f32 0.70710677, %v1332_v24  ;;  %v1344_v33 = vadd.f32 %v1273_v35, %v130_v28  ;;  %v564_v37 = vadd.f32 0.00028619796, %v563_v27  ;;  %v283_v40 = vmul.f32 2.1237322e-06, %v1336_v29 }
  0xc5   :  { %v247_v53 = vmul.f32 %v246_v36, %v1307_v1  ;;  %v222_v60 = vmul.f32 %v221_v43, %v1283_v46  ;;  %v528_v0 = vadd.f32 0.05243302, %v527_v48  ;;  %v211_v34 = vmul.f32 %v210_v14, %v1283_v46 }
  0xc6   :  { %v601_v38 = vmul.f32 %v1341_v32, %v1341_v32  ;;  %v1350_v42 = vmul.f32 0.70710677, %v1344_v33  ;;  %v565_v54 = vmul.f32 %v564_v37, %v1326_v20  ;;  %v284_v59 = vadd.f32 0.00028619796, %v283_v40 }
  0xc7   :  { %v248_v4 = vadd.f32 0.05243302, %v247_v53  ;;  %v1379_v12 = vadd.f32 1.0, %v222_v60  ;;  %v529_v18 = vmul.f32 %v528_v0, %v1301_v58  ;;  %v1406_v36 = vmul.f32 0.5, %v1292_v51 }
  0xc8   :  { %v321_v49 = vmul.f32 %v1350_v42, %v1350_v42  ;;  %v1360_v56 = vmin.f32 %v601_v38, 16.0  ;;  %v566_v5 = vadd.f32 0.0036580483, %v565_v54  ;;  %v285_v8 = vmul.f32 %v284_v59, %v1336_v29 }
  0xc9   :  { %v154_v45 = vpop.f32.mrf.mxu2  ;;  %v249_v39 = vmul.f32 %v248_v4, %v1307_v1  ;;  %1066 = vrcp.f32 %v1379_v12  ;;  %v530_v38 = vadd.f32 0.18741608, %v529_v18  ;;  %v1418_v48 = vmul.f32 0.5, %v1318_v10 }
  0xca   :  { %v1356_v52 = vadd.f32 %v1273_v35, %v154_v45  ;;  %v1364_v62 = vmin.f32 %v321_v49, 16.0  ;;  %v603_v6 = vmul.f32 2.1237322e-06, %v1360_v56  ;;  %v567_v25 = vmul.f32 %v566_v5, %v1326_v20 }
  0xcb   :  { %v133_v57 = vpop.f32.mrf.mxu0  ;;  %v286_v28 = vadd.f32 0.0036580483, %v285_v8  ;;  %v250_v45 = vadd.f32 0.18741608, %v249_v39  ;;  %v1422_v51 = vmul.f32 3.8918573e-05, %v1301_v58  ;;  %v531_v4 = vmul.f32 %v530_v38, %v1301_v58 }
  0xcc   :  { %v1367_v63 = vmul.f32 0.70710677, %v1356_v52  ;;  %v1370_v3 = vadd.f32 %v1273_v35, %v133_v57  ;;  %v323_v15 = vmul.f32 2.1237322e-06, %v1364_v62  ;;  %v604_v26 = vadd.f32 0.00028619796, %v603_v6 }
  0xcd   :  { %v568_v2 = vadd.f32 0.05243302, %v567_v25  ;;  %v287_v49 = vmul.f32 %v286_v28, %v1336_v29  ;;  %v212_v57 = vadd.f32 1.1283791, %v211_v34  ;;  %v1429_v59 = vmul.f32 0.5, %v1332_v24 }
  0xce   :  { %v641_v7 = vmul.f32 %v1367_v63, %v1367_v63  ;;  %v1377_v11 = vmul.f32 0.70710677, %v1370_v3  ;;  %v324_v37 = vadd.f32 0.00028619796, %v323_v15  ;;  %v605_v46 = vmul.f32 %v604_v26, %v1360_v56 }
  0xcf   :  { %v1435_v0 = vpop.eup %1066  ;;  %v251_v8 = vmul.f32 %v250_v45, %v1307_v1  ;;  %v1444_v14 = vmul.f32 0.5, %v1344_v33  ;;  %v569_v18 = vmul.f32 %v568_v2, %v1326_v20  ;;  %v1457_v33 = vmul.f32 %v212_v57, %v1279_v41 }
  0xd0   :  { %v1386_v19 = vmin.f32 %v641_v7, 16.0  ;;  %v361_v21 = vmul.f32 %v1377_v11, %v1377_v11  ;;  %v325_v60 = vmul.f32 %v324_v37, %v1364_v62  ;;  %v606_v24 = vadd.f32 0.0036580483, %v605_v46 }
  0xd1   :  { %v157_v17 = vpop.f32.mrf.mxu2  ;;  %v225_v34 = vmul.f32 %v1435_v0, %v1379_v12  ;;  %v532_v37 = vadd.f32 1.1283791, %v531_v4  ;;  %v1465_v46 = vmul.f32 0.5, %v1356_v52  ;;  %vm230_vm0 = vweird.f32 %v1435_v0 }
  0xd2   :  { %v1391_v22 = vadd.f32 %v1273_v35, %v157_v17  ;;  %v1398_v30 = vmin.f32 %v361_v21, 16.0  ;;  %v643_v40 = vmul.f32 2.1237322e-06, %v1386_v19  ;;  %v288_v21 = vadd.f32 0.05243302, %v287_v49 }
  0xd3   :  { %v136_v27 = vpop.f32.mrf.mxu0  ;;  %v326_v26 = vadd.f32 0.0036580483, %v325_v60  ;;  %v607_v45 = vmul.f32 %v606_v24, %v1360_v56  ;;  %v570_v49 = vadd.f32 0.18741608, %v569_v18  ;;  %v226_v52 = vsub.f32 1.0, %v225_v34 }
  0xd4   :  { %v1401_v31 = vmul.f32 0.70710677, %v1391_v22  ;;  %v1415_v44 = vadd.f32 %v1273_v35, %v136_v27  ;;  %v363_v53 = vmul.f32 2.1237322e-06, %v1398_v30  ;;  %v644_v5 = vadd.f32 0.00028619796, %v643_v40 }
  0xd5   :  { %v289_v60 = vmul.f32 %v288_v21, %v1336_v29  ;;  %v608_v18 = vadd.f32 0.05243302, %v607_v45  ;;  %vm229_vm1 = vweird.f32 %v1379_v12 }
  0xd6   :  { %v681_v43 = vmul.f32 %v1401_v31, %v1401_v31  ;;  %v1433_v10 = vmul.f32 0.70710677, %v1415_v44  ;;  %v364_v39 = vadd.f32 0.00028619796, %v363_v53  ;;  %v645_v38 = vmul.f32 %v644_v5, %v1386_v19  ;;  %vm1522_vm2 = vmor %vm229_vm1, %vm230_vm0 }
  0xd8   :  { %v1426_v54 = vmin.f32 %v681_v43, 16.0  ;;  %v401_v15 = vmul.f32 %v1433_v10, %v1433_v10  ;;  %v252_v43 = vadd.f32 1.1283791, %v251_v8  ;;  %v365_v53 = vmul.f32 %v364_v39, %v1398_v30 }
  0xd9   :  { %v160_v61 = vpop.f32.mrf.mxu2  ;;  %v646_v8 = vadd.f32 0.0036580483, %v645_v38 }
  0xda   :  { %v683_v6 = vmul.f32 2.1237322e-06, %v1426_v54  ;;  %v1440_v7 = vadd.f32 %v1273_v35, %v160_v61  ;;  %v1449_v27 = vmin.f32 %v401_v15, 16.0  ;;  %v327_v61 = vmul.f32 %v326_v26, %v1364_v62 }
  0xdb   :  { %v139_v17 = vpop.f32.mrf.mxu0  ;;  %v366_v26 = vadd.f32 0.0036580483, %v365_v53  ;;  %v1502_v53 = vmul.f32 0.5, %v1370_v3 }
  0xdc   :  { %v684_v25 = vadd.f32 0.00028619796, %v683_v6  ;;  %v1452_v28 = vadd.f32 %v1273_v35, %v139_v17  ;;  %v1461_v40 = vmul.f32 0.70710677, %v1440_v7  ;;  %v403_v2 = vmul.f32 2.1237322e-06, %v1449_v27 }
  0xdd   :  { %v1478_v6 = vmul.f32 %v532_v37, %v1289_v50  ;;  %v1483_v17 = vmul.f32 %v252_v43, %v1299_v55  ;;  %v290_v37 = vadd.f32 0.18741608, %v289_v60  ;;  %v328_v38 = vadd.f32 0.05243302, %v327_v61 }
  0xde   :  { %1954 = vst [vmem:[#allocation12_spill] sm:$0xff] %v1452_v28  ;;  %v685_v41 = vmul.f32 %v684_v25, %v1426_v54  ;;  %v721_v57 = vmul.f32 %v1461_v40, %v1461_v40  ;;  %v1475_v4 = vmul.f32 0.70710677, %v1452_v28  ;;  %v404_v24 = vadd.f32 0.00028619796, %v403_v2 }
  0xdf   :  { %v571_v25 = vmul.f32 %v570_v49, %v1326_v20  ;;  %v227_v55 = vmul.f32 %v1435_v0, %v226_v52  ;;  %v647_v43 = vmul.f32 %v646_v8, %v1386_v19  ;;  %v609_v49 = vmul.f32 %v608_v18, %v1360_v56 }
  0xe0   :  { %v1480_v15 = vmin.f32 %v721_v57, 16.0  ;;  %v441_v21 = vmul.f32 %v1475_v4, %v1475_v4  ;;  %v686_v34 = vadd.f32 0.0036580483, %v685_v41  ;;  %v405_v45 = vmul.f32 %v404_v24, %v1449_v27 }
  0xe1   :  { %v163_v5 = vpop.f32.mrf.mxu2  ;;  %v1505_v41 = vmul.f32 0.5, %v1391_v22  ;;  %v572_v61 = vadd.f32 1.1283791, %v571_v25  ;;  %v367_v52 = vmul.f32 %v366_v26, %v1398_v30  ;;  %v228_v18 = vadd.f32 %v1435_v0, %v227_v55 }
  0xe2   :  { %v1488_v39 = vadd.f32 %v1273_v35, %v163_v5  ;;  %v723_v50 = vmul.f32 2.1237322e-06, %v1480_v15  ;;  %v1492_v2 = vmin.f32 %v441_v21, 16.0  ;;  %v687_v8 = vmul.f32 %v686_v34, %v1426_v54 }
  0xe3   :  { %1957 = vst [vmem:[#allocation15_spill] sm:$0xff] %v1505_v41  ;;  %v291_v3 = vmul.f32 %v290_v37, %v1336_v29  ;;  %v329_v22 = vmul.f32 %v328_v38, %v1364_v62  ;;  %v406_v25 = vadd.f32 0.0036580483, %v405_v45  ;;  %v610_v28 = vadd.f32 0.18741608, %v609_v49 }
  0xe4   :  { %1955 = vst [vmem:[#allocation13_spill] sm:$0xff] %v1488_v39  ;;  %v724_v57 = vadd.f32 0.00028619796, %v723_v50  ;;  %v1498_v5 = vmul.f32 0.70710677, %v1488_v39  ;;  %v235_v37 = vand.u32 2147483648, %v1379_v12  ;;  %v232_v45 = vsel %vm1522_vm2, %v1435_v0, %v228_v18  ;;  %v142_v0 = vpop.f32.mrf.mxu0 }
  0xe5   :  { %v443_v60 = vmul.f32 2.1237322e-06, %v1492_v2  ;;  %v648_v39 = vadd.f32 0.05243302, %v647_v43  ;;  %v233_v34 = vand.u32 2147483647, %v1379_v12  ;;  %v611_v41 = vmul.f32 %v610_v28, %v1360_v56 }
  0xe6   :  { %1956 = vst [vmem:[#allocation14_spill] sm:$0xff] %v1498_v5  ;;  %v725_v24 = vmul.f32 %v724_v57, %v1480_v15  ;;  %v761_v50 = vmul.f32 %v1498_v5, %v1498_v5  ;;  %v1520_v57 = vmul.f32 %v572_v61, %v1315_v9  ;;  %v688_v5 = vadd.f32 0.05243302, %v687_v8 }
  0xe7   :  { %v444_v21 = vadd.f32 0.00028619796, %v443_v60  ;;  %v368_v60 = vadd.f32 0.05243302, %v367_v52  ;;  %v535_v49 = vadd.f32 0.001143296, %v1422_v51  ;;  %v649_v61 = vmul.f32 %v648_v39, %v1386_v19 }
  0xe8   :  { %v726_v26 = vadd.f32 0.0036580483, %v725_v24  ;;  %v1528_v43 = vmin.f32 %v761_v50, 16.0  ;;  %v330_v9 = vadd.f32 0.18741608, %v329_v22  ;;  %v407_v52 = vmul.f32 %v406_v25, %v1449_v27 }
  0xe9   :  { %v445_v38 = vmul.f32 %v444_v21, %v1492_v2  ;;  %v236_v8 = vor.u32 1.1754944e-38, %v235_v37  ;;  %v292_v24 = vadd.f32 1.1283791, %v291_v3  ;;  %vm234_vm3 = vcmp.eq.f32.partialorder %v233_v34, 8.507059e+37 }
  0xea   :  { %v727_v12 = vmul.f32 %v726_v26, %v1480_v15  ;;  %v369_v21 = vmul.f32 %v368_v60, %v1398_v30  ;;  %v689_v50 = vmul.f32 %v688_v5, %v1426_v54  ;;  %v536_v51 = vmul.f32 %v535_v49, %v1301_v58 }
  0xeb   :  { %v237_v55 = vsel %vm234_vm3, %v236_v8, %v232_v45  ;;  %v1542_v18 = vmul.f32 0.5, %v1415_v44  ;;  %v446_v39 = vadd.f32 0.0036580483, %v445_v38  ;;  %v763_v22 = vmul.f32 2.1237322e-06, %v1528_v43 }
  0xec   :  { %v238_v3 = vmul.f32 %v237_v55, %v1457_v33  ;;  %v331_v28 = vmul.f32 %v330_v9, %v1364_v62  ;;  %v650_v25 = vadd.f32 0.18741608, %v649_v61  ;;  %v408_v26 = vadd.f32 0.05243302, %v407_v52 }
  0xed   :  { %1960 = vst [vmem:[#allocation16_spill] sm:$0xff] %v1542_v18  ;;  %v537_v34 = vadd.f32 0.014752088, %v536_v51  ;;  %v612_v60 = vadd.f32 1.1283791, %v611_v41  ;;  %v1548_v45 = vadd.f32 %v1273_v35, %v142_v0  ;;  %v1553_v18 = vmul.f32 0.5, %v1440_v7 }
  0xee   :  { %v728_v37 = vadd.f32 0.05243302, %v727_v12  ;;  %v1010_v5 = vclamps-f32 %v238_v3, 1.0  ;;  %v370_v49 = vadd.f32 0.18741608, %v369_v21  ;;  %v447_v33 = vmul.f32 %v446_v39, %v1492_v2 }
  0xef   :  { %1961 = vst [vmem:[#allocation17_spill] sm:$0xff] %v1548_v45  ;;  %v690_v8 = vadd.f32 0.18741608, %v689_v50  ;;  %v538_v44 = vmul.f32 %v537_v34, %v1301_v58  ;;  %v254_v38 = vmul.f32 3.8918573e-05, %v1307_v1  ;;  %v651_v41 = vmul.f32 %v650_v25, %v1386_v19 }
  0xf0   :  { %v764_v9 = vadd.f32 0.00028619796, %v763_v22  ;;  %v841_v61 = vadd.f32 1.0, %v1010_v5  ;;  %v332_v52 = vadd.f32 1.1283791, %v331_v28  ;;  %v409_v12 = vmul.f32 %v408_v26, %v1449_v27 }
  0xf1   :  { %v539_v55 = vadd.f32 0.112945676, %v538_v44  ;;  %v729_v21 = vmul.f32 %v728_v37, %v1480_v15  ;;  %v1561_v0 = vmul.f32 0.70710677, %v1548_v45  ;;  %v255_v51 = vadd.f32 0.001143296, %v254_v38 }
  0xf2   :  { %v857_v50 = vmul.f32 %v841_v61, %v1382_v13  ;;  %v371_v7 = vmul.f32 %v370_v49, %v1398_v30  ;;  %v691_v39 = vmul.f32 %v690_v8, %v1426_v54  ;;  %v574_v3 = vmul.f32 3.8918573e-05, %v1326_v20 }
  0xf3   :  { %v540_v22 = vmul.f32 %v539_v55, %v1301_v58  ;;  %v448_v28 = vadd.f32 0.05243302, %v447_v33  ;;  %v765_v25 = vmul.f32 %v764_v9, %v1528_v43  ;;  %v256_v26 = vmul.f32 %v255_v51, %v1307_v1 }
  0xf4   :  { %909 = vmatmul.f32.vlgmr.msra.gmra.mxu1 %v857_v50  ;;  %v294_v13 = vmul.f32 3.8918573e-05, %v1336_v29  ;;  %v1571_v34 = vmul.f32 %v292_v24, %v1324_v16  ;;  %v410_v37 = vadd.f32 0.18741608, %v409_v12  ;;  %v575_v49 = vadd.f32 0.001143296, %v574_v3 }
  0xf5   :  { %v541_v5 = vadd.f32 0.4994258, %v540_v22  ;;  %v730_v44 = vadd.f32 0.18741608, %v729_v21  ;;  %v481_v8 = vmul.f32 %v1561_v0, %v1561_v0  ;;  %v257_v38 = vadd.f32 0.014752088, %v256_v26  ;;  %v166_v22 = vpop.f32.mrf.mxu2 }
  0xf6   :  { %v295_v61 = vadd.f32 0.001143296, %v294_v13  ;;  %v652_v33 = vadd.f32 1.1283791, %v651_v41  ;;  %v372_v55 = vadd.f32 1.1283791, %v371_v7  ;;  %v449_v51 = vmul.f32 %v448_v28, %v1492_v2 }
  0xf7   :  { %v692_v9 = vadd.f32 1.1283791, %v691_v39  ;;  %v542_v50 = vmul.f32 %v541_v5, %v1301_v58  ;;  %v766_v45 = vadd.f32 0.0036580483, %v765_v25  ;;  %v258_v16 = vmul.f32 %v257_v38, %v1307_v1 }
  0xf8   :  { %v576_v24 = vmul.f32 %v575_v49, %v1326_v20  ;;  %v411_v12 = vmul.f32 %v410_v37, %v1449_v27  ;;  %v296_v3 = vmul.f32 %v295_v61, %v1336_v29  ;;  %v614_v41 = vmul.f32 3.8918573e-05, %v1360_v56 }
  0xf9   :  { %v1580_v21 = vadd.f32 1.0, %v542_v50  ;;  %v731_v7 = vmul.f32 %v730_v44, %v1480_v15  ;;  %v1585_v39 = vmin.f32 %v481_v8, 16.0  ;;  %v259_v58 = vadd.f32 0.112945676, %v258_v16 }
  0xfa   :  { %v577_v28 = vadd.f32 0.014752088, %v576_v24  ;;  %v1588_v25 = vmul.f32 %v612_v60, %v1341_v32  ;;  %v1591_v26 = vmul.f32 %v332_v52, %v1350_v42  ;;  %v1594_v13 = vmul.f32 %v652_v33, %v1367_v63 }
  0xfb   :  { %1068 = vrcp.f32 %v1580_v21  ;;  %v450_v37 = vadd.f32 0.18741608, %v449_v51  ;;  %v767_v5 = vmul.f32 %v766_v45, %v1528_v43  ;;  %v1599_v49 = vadd.f32 %v1273_v35, %v166_v22 }
  0xfc   :  { %v260_v44 = vmul.f32 %v259_v58, %v1307_v1  ;;  %v1603_v8 = vmul.f32 %v372_v55, %v1377_v11  ;;  %v578_v32 = vmul.f32 %v577_v28, %v1326_v20  ;;  %v297_v42 = vadd.f32 0.014752088, %v296_v3 }
  0xfd   :  { %1962 = vst [vmem:[#allocation18_spill] sm:$0xff] %v1599_v49  ;;  %v615_v60 = vadd.f32 0.001143296, %v614_v41  ;;  %v1607_v63 = vmul.f32 %v692_v9, %v1401_v31  ;;  %v412_v52 = vadd.f32 1.1283791, %v411_v12  ;;  %v451_v11 = vmul.f32 %v450_v37, %v1492_v2 }
  0xfe   :  { %v732_v38 = vadd.f32 1.1283791, %v731_v7  ;;  %v483_v61 = vmul.f32 2.1237322e-06, %v1585_v39  ;;  %v261_v45 = vadd.f32 0.4994258, %v260_v44  ;;  %v298_v35 = vmul.f32 %v297_v42, %v1336_v29 }
  0xff   :  { %v579_v33 = vadd.f32 0.112945676, %v578_v32  ;;  %v616_v50 = vmul.f32 %v615_v60, %v1360_v56  ;;  %v768_v55 = vadd.f32 0.05243302, %v767_v5  ;;  %v1614_v51 = vmul.f32 0.70710677, %v1599_v49 }
 0x100   :  { %v334_v16 = vmul.f32 3.8918573e-05, %v1364_v62  ;;  %v262_v9 = vmul.f32 %v261_v45, %v1307_v1  ;;  %v299_v12 = vadd.f32 0.112945676, %v298_v35  ;;  %v1620_v3 = vmul.f32 %v412_v52, %v1433_v10 }
 0x101   :  { %1963 = vst [vmem:[#allocation19_spill] sm:$0xff] %v1614_v51  ;;  %v1069_v31 = vpop.eup %1068  ;;  %v580_v24 = vmul.f32 %v579_v33, %v1326_v20  ;;  %v617_v22 = vadd.f32 0.014752088, %v616_v50  ;;  %v1623_v41 = vmul.f32 %v732_v38, %v1461_v40  ;;  %v484_v7 = vadd.f32 0.00028619796, %v483_v61 }
 0x102   :  { %v545_v58 = vmul.f32 %v1069_v31, %v1580_v21  ;;  %v1626_v28 = vadd.f32 1.0, %v262_v9  ;;  %v300_v5 = vmul.f32 %v299_v12, %v1336_v29  ;;  %v1630_v44 = vadd.f32 1.1283791, %v451_v11 }
 0x103   :  { %v581_v37 = vadd.f32 0.4994258, %v580_v24  ;;  %v618_v1 = vmul.f32 %v617_v22, %v1360_v56  ;;  %v769_v32 = vmul.f32 %v768_v55, %v1528_v43  ;;  %v335_v10 = vadd.f32 0.001143296, %v334_v16 }
 0x104   :  { %v546_v42 = vsub.f32 1.0, %v545_v58  ;;  %v553_v60 = vand.u32 2147483647, %v1580_v21  ;;  %v555_v40 = vand.u32 2147483648, %v1580_v21  ;;  %v801_v52 = vmul.f32 %v1614_v51, %v1614_v51 }
 0x105   :  { %1070 = vrcp.f32 %v1626_v28  ;;  %vm550_vm4 = vweird.f32 %v1069_v31  ;;  %v582_v61 = vmul.f32 %v581_v37, %v1326_v20  ;;  %v301_v45 = vadd.f32 0.4994258, %v300_v5 }
 0x106   :  { %v547_v38 = vmul.f32 %v1069_v31, %v546_v42  ;;  %v485_v33 = vmul.f32 %v484_v7, %v1585_v39  ;;  %v619_v35 = vadd.f32 0.112945676, %v618_v1  ;;  %v336_v50 = vmul.f32 %v335_v10, %v1364_v62 }
 0x107   :  { %v654_v11 = vmul.f32 3.8918573e-05, %v1386_v19  ;;  %vm549_vm5 = vweird.f32 %v1580_v21  ;;  %v1643_v16 = vadd.f32 1.0, %v582_v61  ;;  %v302_v9 = vmul.f32 %v301_v45, %v1336_v29 }
 0x108   :  { %v548_v55 = vadd.f32 %v1069_v31, %v547_v38  ;;  %v1646_v24 = vadd.f32 0.18741608, %v769_v32  ;;  %vm551_vm6 = vmor %vm549_vm5, %vm550_vm4  ;;  %vm554_vm7 = vcmp.eq.f32.partialorder %v553_v60, 8.507059e+37  ;;  %v556_v20 = vor.u32 1.1754944e-38, %v555_v40 }
 0x109   :  { %v1648_v12 = vmin.f32 %v801_v52, 16.0  ;;  %v273_v7 = vand.u32 2147483647, %v1626_v28  ;;  %1072 = vrcp.f32 %v1643_v16  ;;  %v620_v58 = vmul.f32 %v619_v35, %v1360_v56 }
 0x10a   :  { %v552_v22 = vsel %vm551_vm6, %v1069_v31, %v548_v55  ;;  %v1653_v5 = vadd.f32 1.0, %v302_v9  ;;  %v337_v1 = vadd.f32 0.014752088, %v336_v50  ;;  %v655_v29 = vadd.f32 0.001143296, %v654_v11 }
 0x10b   :  { %v1071_v37 = vpop.eup %1070  ;;  %v557_v21 = vsel %vm554_vm7, %v556_v20, %v552_v22  ;;  %v1655_v32 = vadd.f32 0.0036580483, %v485_v33  ;;  %v275_v31 = vand.u32 2147483648, %v1626_v28  ;;  %v1661_v60 = vmul.f32 2.1237322e-06, %v1648_v12 }
 0x10c   :  { %v558_v42 = vmul.f32 %v557_v21, %v1478_v6  ;;  %v265_v10 = vmul.f32 %v1071_v37, %v1626_v28  ;;  %vm269_vm8 = vweird.f32 %v1626_v28  ;;  %v593_v40 = vand.u32 2147483647, %v1643_v16 }
 0x10d   :  { %1074 = vrcp.f32 %v1653_v5  ;;  %vm1666_vm9 = vcmp.eq.f32.partialorder %v273_v7, 8.507059e+37  ;;  %v595_v6 = vand.u32 2147483648, %v1643_v16  ;;  %v621_v45 = vadd.f32 0.4994258, %v620_v58 }
 0x10e   :  { %v1018_v52 = vclamps-f32 %v558_v42, 1.0  ;;  %v266_v38 = vsub.f32 1.0, %v265_v10  ;;  %v338_v33 = vmul.f32 %v337_v1, %v1364_v62  ;;  %v656_v35 = vmul.f32 %v655_v29, %v1386_v19 }
 0x10f   :  { %v374_v50 = vmul.f32 3.8918573e-05, %v1398_v30  ;;  %v1073_v11 = vpop.eup %1072  ;;  %vm270_vm10 = vweird.f32 %v1071_v37  ;;  %v276_v20 = vor.u32 1.1754944e-38, %v275_v31  ;;  %vm589_vm11 = vweird.f32 %v1643_v16 }
 0x110   :  { %v849_v55 = vadd.f32 1.0, %v1018_v52  ;;  %v267_v9 = vmul.f32 %v1071_v37, %v266_v38  ;;  %v585_v22 = vmul.f32 %v1073_v11, %v1643_v16  ;;  %vm1676_vm12 = vcmp.eq.f32.partialorder %v593_v40, 8.507059e+37  ;;  %vm271_vm13 = vmor %vm269_vm8, %vm270_vm10 }
 0x111   :  { %v622_v58 = vmul.f32 %v621_v45, %v1360_v56  ;;  %v596_v29 = vor.u32 1.1754944e-38, %v595_v6  ;;  %v339_v42 = vadd.f32 0.112945676, %v338_v33  ;;  %v657_v38 = vadd.f32 0.014752088, %v656_v35 }
 0x112   :  { %v865_v21 = vmul.f32 %v849_v55, %v1394_v23  ;;  %v268_v1 = vadd.f32 %v1071_v37, %v267_v9  ;;  %v586_v31 = vsub.f32 1.0, %v585_v22  ;;  %v375_v49 = vadd.f32 0.001143296, %v374_v50 }
 0x113   :  { %v1075_v10 = vpop.eup %1074  ;;  %v1684_v52 = vadd.f32 1.0, %v622_v58  ;;  %v313_v56 = vand.u32 2147483647, %v1653_v5  ;;  %v340_v23 = vmul.f32 %v339_v42, %v1364_v62  ;;  %vm590_vm14 = vweird.f32 %v1073_v11 }
 0x114   :  { %933 = vmatmul.f32.vlgmr.msra.gmra.mxu3 %v865_v21  ;;  %v272_v40 = vsel %vm271_vm13, %v1071_v37, %v268_v1  ;;  %v305_v51 = vmul.f32 %v1075_v10, %v1653_v5  ;;  %v587_v45 = vmul.f32 %v1073_v11, %v586_v31  ;;  %vm309_vm15 = vweird.f32 %v1653_v5  ;;  %vm591_vm0 = vmor %vm589_vm11, %vm590_vm14 }
 0x115   :  { %v277_v6 = vsel %vm1666_vm9, %v276_v20, %v272_v40  ;;  %1076 = vrcp.f32 %v1684_v52  ;;  %v315_v37 = vand.u32 2147483648, %v1653_v5  ;;  %v341_v50 = vadd.f32 0.4994258, %v340_v23 }
 0x116   :  { %v278_v28 = vmul.f32 %v277_v6, %v1483_v17  ;;  %v306_v33 = vsub.f32 1.0, %v305_v51  ;;  %v588_v35 = vadd.f32 %v1073_v11, %v587_v45  ;;  %v658_v55 = vmul.f32 %v657_v38, %v1386_v19 }
 0x117   :  { %v376_v9 = vmul.f32 %v375_v49, %v1398_v30  ;;  %vm310_vm1 = vweird.f32 %v1075_v10  ;;  %vm1699_vm2 = vcmp.eq.f32.partialorder %v313_v56, 8.507059e+37  ;;  %v342_v51 = vmul.f32 %v341_v50, %v1364_v62 }
 0x118   :  { %v1011_v22 = vclamps-f32 %v278_v28, 1.0  ;;  %v307_v61 = vmul.f32 %v1075_v10, %v306_v33  ;;  %v592_v17 = vsel %vm591_vm0, %v1073_v11, %v588_v35  ;;  %v659_v58 = vadd.f32 0.112945676, %v658_v55  ;;  %vm311_vm3 = vmor %vm309_vm15, %vm310_vm1 }
 0x119   :  { %v377_v21 = vadd.f32 0.014752088, %v376_v9  ;;  %v597_v42 = vsel %vm1676_vm12, %v596_v29, %v592_v17  ;;  %v316_v31 = vor.u32 1.1754944e-38, %v315_v37  ;;  %v1709_v40 = vadd.f32 1.0, %v342_v51 }
 0x11a   :  { %v842_v1 = vadd.f32 1.0, %v1011_v22  ;;  %v308_v49 = vadd.f32 %v1075_v10, %v307_v61  ;;  %v598_v16 = vmul.f32 %v597_v42, %v1520_v57  ;;  %v660_v11 = vmul.f32 %v659_v58, %v1386_v19 }
 0x11b   :  { %v1077_v38 = vpop.eup %1076  ;;  %v378_v62 = vmul.f32 %v377_v21, %v1398_v30  ;;  %v633_v29 = vand.u32 2147483647, %v1684_v52  ;;  %1078 = vrcp.f32 %v1709_v40  ;;  %v694_v5 = vmul.f32 3.8918573e-05, %v1426_v54 }
 0x11c   :  { %v858_v56 = vmul.f32 %v842_v1, %v1406_v36  ;;  %v312_v23 = vsel %vm311_vm3, %v1075_v10, %v308_v49  ;;  %v625_v7 = vmul.f32 %v1077_v38, %v1684_v52  ;;  %v1019_v6 = vclamps-f32 %v598_v16, 1.0 }
 0x11d   :  { %v317_v57 = vsel %vm1699_vm2, %v316_v31, %v312_v23  ;;  %v1721_v45 = vadd.f32 0.00028619796, %v1661_v60  ;;  %v635_v10 = vand.u32 2147483648, %v1684_v52  ;;  %vm629_vm4 = vweird.f32 %v1684_v52 }
 0x11e   :  { %912 = vmatmul.f32.gmra.mxu1 %v858_v56  ;;  %v318_v28 = vmul.f32 %v317_v57, %v1571_v34  ;;  %v626_v36 = vsub.f32 1.0, %v625_v7  ;;  %v850_v33 = vadd.f32 1.0, %v1019_v6  ;;  %v661_v37 = vadd.f32 0.4994258, %v660_v11 }
 0x11f   :  { %v379_v35 = vadd.f32 0.112945676, %v378_v62  ;;  %vm630_vm5 = vweird.f32 %v1077_v38  ;;  %vm1726_vm6 = vcmp.eq.f32.partialorder %v633_v29, 8.507059e+37  ;;  %v695_v61 = vadd.f32 0.001143296, %v694_v5 }
 0x120   :  { %v1012_v50 = vclamps-f32 %v318_v28, 1.0  ;;  %v627_v55 = vmul.f32 %v1077_v38, %v626_v36  ;;  %v866_v60 = vmul.f32 %v850_v33, %v1409_v47  ;;  %v662_v22 = vmul.f32 %v661_v37, %v1386_v19  ;;  %vm631_vm7 = vmor %vm629_vm4, %vm630_vm5 }
 0x121   :  { %v380_v34 = vmul.f32 %v379_v35, %v1398_v30  ;;  %v636_v51 = vor.u32 1.1754944e-38, %v635_v10  ;;  %v353_v58 = vand.u32 2147483647, %v1709_v40  ;;  %v1079_v21 = vpop.eup %1078  ;;  %v696_v47 = vmul.f32 %v695_v61, %v1426_v54 }
 0x122   :  { %v843_v20 = vadd.f32 1.0, %v1012_v50  ;;  %v628_v17 = vadd.f32 %v1077_v38, %v627_v55  ;;  %936 = vmatmul.f32.gmra.mxu3 %v866_v60  ;;  %v1736_v1 = vadd.f32 1.0, %v662_v22  ;;  %v414_v19 = vmul.f32 3.8918573e-05, %v1449_v27 }
 0x123   :  { %v381_v42 = vadd.f32 0.4994258, %v380_v34  ;;  %v345_v16 = vmul.f32 %v1079_v21, %v1709_v40  ;;  %vm349_vm8 = vweird.f32 %v1709_v40  ;;  %v355_v52 = vand.u32 2147483648, %v1709_v40 }
 0x124   :  { %v859_v49 = vmul.f32 %v843_v20, %v1418_v48  ;;  %v632_v31 = vsel %vm631_vm7, %v1077_v38, %v628_v17  ;;  %1080 = vrcp.f32 %v1736_v1  ;;  %v734_v62 = vmul.f32 3.8918573e-05, %v1480_v15 }
 0x125   :  { %v637_v11 = vsel %vm1726_vm6, %v636_v51, %v632_v31  ;;  %v346_v23 = vsub.f32 1.0, %v345_v16  ;;  %vm1749_vm9 = vcmp.eq.f32.partialorder %v353_v58, 8.507059e+37  ;;  %v382_v38 = vmul.f32 %v381_v42, %v1398_v30 }
 0x126   :  { %915 = vmatmul.f32.gmra.mxu1 %v859_v49  ;;  %v638_v56 = vmul.f32 %v637_v11, %v1588_v25  ;;  %vm350_vm10 = vweird.f32 %v1079_v21  ;;  %v697_v7 = vadd.f32 0.014752088, %v696_v47  ;;  %v415_v29 = vadd.f32 0.001143296, %v414_v19 }
 0x127   :  { %v454_v6 = vmul.f32 3.8918573e-05, %v1492_v2  ;;  %v347_v5 = vmul.f32 %v1079_v21, %v346_v23  ;;  %v673_v28 = vand.u32 2147483647, %v1736_v1  ;;  %v1756_v36 = vadd.f32 1.0, %v382_v38  ;;  %vm351_vm11 = vmor %vm349_vm8, %vm350_vm10 }
 0x128   :  { %v1020_v57 = vclamps-f32 %v638_v56, 1.0  ;;  %v356_v10 = vor.u32 1.1754944e-38, %v355_v52  ;;  %v675_v25 = vand.u32 2147483648, %v1736_v1  ;;  %v698_v33 = vmul.f32 %v697_v7, %v1426_v54 }
 0x129   :  { %v735_v37 = vadd.f32 0.001143296, %v734_v62  ;;  %v348_v50 = vadd.f32 %v1079_v21, %v347_v5  ;;  %1082 = vrcp.f32 %v1756_v36  ;;  %v416_v30 = vmul.f32 %v415_v29, %v1449_v27 }
 0x12a   :  { %v851_v35 = vadd.f32 1.0, %v1020_v57  ;;  %v1081_v55 = vpop.eup %1080  ;;  %vm669_vm12 = vweird.f32 %v1736_v1  ;;  %v699_v9 = vadd.f32 0.112945676, %v698_v33  ;;  %v455_v22 = vadd.f32 0.001143296, %v454_v6 }
 0x12b   :  { %v736_v60 = vmul.f32 %v735_v37, %v1480_v15  ;;  %v352_v61 = vsel %vm351_vm11, %v1079_v21, %v348_v50  ;;  %v665_v20 = vmul.f32 %v1081_v55, %v1736_v1  ;;  %vm1769_vm13 = vcmp.eq.f32.partialorder %v673_v28, 8.507059e+37 }
 0x12c   :  { %v867_v34 = vmul.f32 %v851_v35, %v1429_v59  ;;  %v357_v51 = vsel %vm1749_vm9, %v356_v10, %v352_v61  ;;  %v676_v40 = vor.u32 1.1754944e-38, %v675_v25  ;;  %v393_v58 = vand.u32 2147483647, %v1756_v36 }
 0x12d   :  { %v700_v42 = vmul.f32 %v699_v9, %v1426_v54  ;;  %v358_v47 = vmul.f32 %v357_v51, %v1591_v26  ;;  %v666_v19 = vsub.f32 1.0, %v665_v20  ;;  %v417_v59 = vadd.f32 0.014752088, %v416_v30 }
 0x12e   :  { %939 = vmatmul.f32.gmra.mxu3 %v867_v34  ;;  %v737_v21 = vadd.f32 0.014752088, %v736_v60  ;;  %vm670_vm14 = vweird.f32 %v1081_v55  ;;  %v456_v31 = vmul.f32 %v455_v22, %v1492_v2  ;;  %v774_v16 = vmul.f32 3.8918573e-05, %v1528_v43 }
 0x12f   :  { %v701_v49 = vadd.f32 0.4994258, %v700_v42  ;;  %v1083_v11 = vpop.eup %1082  ;;  %v1013_v52 = vclamps-f32 %v358_v47, 1.0  ;;  %v667_v62 = vmul.f32 %v1081_v55, %v666_v19  ;;  %v418_v56 = vmul.f32 %v417_v59, %v1449_v27  ;;  %vm671_vm15 = vmor %vm669_vm12, %vm670_vm14 }
 0x130   :  { %v738_v23 = vmul.f32 %v737_v21, %v1480_v15  ;;  %v385_v48 = vmul.f32 %v1083_v11, %v1756_v36  ;;  %v395_v26 = vand.u32 2147483648, %v1756_v36  ;;  %v457_v7 = vadd.f32 0.014752088, %v456_v31 }
 0x131   :  { %v702_v38 = vmul.f32 %v701_v49, %v1426_v54  ;;  %v844_v29 = vadd.f32 1.0, %v1013_v52  ;;  %v668_v6 = vadd.f32 %v1081_v55, %v667_v62  ;;  %v419_v57 = vadd.f32 0.112945676, %v418_v56 }
 0x132   :  { %v739_v5 = vadd.f32 0.112945676, %v738_v23  ;;  %v386_v28 = vsub.f32 1.0, %v385_v48  ;;  %v458_v25 = vmul.f32 %v457_v7, %v1492_v2  ;;  %v775_v33 = vadd.f32 0.001143296, %v774_v16 }
 0x133   :  { %v1788_v10 = vadd.f32 1.0, %v702_v38  ;;  %v860_v37 = vmul.f32 %v844_v29, %v1444_v14  ;;  %v672_v35 = vsel %vm671_vm15, %v1081_v55, %v668_v6  ;;  %v420_v54 = vmul.f32 %v419_v57, %v1449_v27 }
 0x134   :  { %v740_v50 = vmul.f32 %v739_v5, %v1480_v15  ;;  %v677_v30 = vsel %vm1769_vm13, %v676_v40, %v672_v35  ;;  %v387_v9 = vmul.f32 %v1083_v11, %v386_v28  ;;  %vm390_vm0 = vweird.f32 %v1083_v11 }
 0x135   :  { %1084 = vrcp.f32 %v1788_v10  ;;  %918 = vmatmul.f32.gmra.mxu1 %v860_v37  ;;  %v678_v1 = vmul.f32 %v677_v30, %v1594_v13  ;;  %vm389_vm1 = vweird.f32 %v1756_v36  ;;  %vm1799_vm2 = vcmp.eq.f32.partialorder %v393_v58, 8.507059e+37 }
 0x136   :  { %v421_v14 = vadd.f32 0.4994258, %v420_v54  ;;  %v388_v55 = vadd.f32 %v1083_v11, %v387_v9  ;;  %v741_v22 = vadd.f32 0.4994258, %v740_v50  ;;  %v459_v34 = vadd.f32 0.112945676, %v458_v25  ;;  %vm391_vm3 = vmor %vm389_vm1, %vm390_vm0 }
 0x137   :  { %v776_v61 = vmul.f32 %v775_v33, %v1528_v43  ;;  %v1021_v20 = vclamps-f32 %v678_v1, 1.0  ;;  %v396_v17 = vor.u32 1.1754944e-38, %v395_v26  ;;  %v494_v40 = vmul.f32 3.8918573e-05, %v1585_v39 }
 0x138   :  { %v422_v51 = vmul.f32 %v421_v14, %v1449_v27  ;;  %v392_v13 = vsel %vm391_vm3, %v1083_v11, %v388_v55  ;;  %v742_v36 = vmul.f32 %v741_v22, %v1480_v15  ;;  %v460_v58 = vmul.f32 %v459_v34, %v1492_v2 }
 0x139   :  { %v777_v42 = vadd.f32 0.014752088, %v776_v61  ;;  %v487_v47 = vmul.f32 %v1655_v32, %v1585_v39  ;;  %v852_v19 = vadd.f32 1.0, %v1021_v20  ;;  %v397_v59 = vsel %vm1799_vm2, %v396_v17, %v392_v13  ;;  %v1984_v13 = vld [vmem:[#allocation12_spill] sm:$0xff] }
 0x13a   :  { %v1812_v21 = vadd.f32 1.0, %v422_v51  ;;  %v805_v27 = vmul.f32 %v1721_v45, %v1648_v12  ;;  %v398_v31 = vmul.f32 %v397_v59, %v1603_v8  ;;  %v1817_v16 = vadd.f32 1.0, %v742_v36 }
 0x13b   :  { %v1085_v49 = vpop.eup %1084  ;;  %v461_v15 = vadd.f32 0.4994258, %v460_v58  ;;  %v868_v11 = vmul.f32 %v852_v19, %v1465_v46  ;;  %v778_v32 = vmul.f32 %v777_v42, %v1528_v43  ;;  %v1825_v62 = vmul.f32 %v1630_v44, %v1475_v4 }
 0x13c   :  { %v705_v52 = vmul.f32 %v1085_v49, %v1788_v10  ;;  %1086 = vrcp.f32 %v1812_v21  ;;  %v1014_v56 = vclamps-f32 %v398_v31, 1.0  ;;  %v713_v45 = vand.u32 2147483647, %v1788_v10 }
 0x13d   :  { %v495_v23 = vadd.f32 0.001143296, %v494_v40  ;;  %v1830_v8 = vmul.f32 %v1646_v24, %v1528_v43  ;;  %942 = vmatmul.f32.gmra.mxu3 %v868_v11  ;;  %v715_v48 = vand.u32 2147483648, %v1788_v10  ;;  %1088 = vrcp.f32 %v1817_v16 }
 0x13e   :  { %v706_v46 = vsub.f32 1.0, %v705_v52  ;;  %v1834_v26 = vadd.f32 0.05243302, %v487_v47  ;;  %v1836_v38 = vadd.f32 0.0036580483, %v805_v27  ;;  %v845_v4 = vadd.f32 1.0, %v1014_v56 }
 0x13f   :  { %vm709_vm4 = vweird.f32 %v1788_v10  ;;  %vm710_vm5 = vweird.f32 %v1085_v49  ;;  %v462_v7 = vmul.f32 %v461_v15, %v1492_v2  ;;  %v779_v29 = vadd.f32 0.112945676, %v778_v32 }
 0x140   :  { %v707_v44 = vmul.f32 %v1085_v49, %v706_v46  ;;  %v861_v24 = vmul.f32 %v845_v4, %v1502_v53  ;;  %vm1841_vm6 = vcmp.eq.f32.partialorder %v713_v45, 8.507059e+37  ;;  %v496_v57 = vmul.f32 %v495_v23, %v1585_v39  ;;  %vm711_vm7 = vmor %vm709_vm4, %vm710_vm5 }
 0x141   :  { %v814_v5 = vmul.f32 3.8918573e-05, %v1648_v12  ;;  %v716_v33 = vor.u32 1.1754944e-38, %v715_v48  ;;  %v1847_v37 = vadd.f32 1.0, %v462_v7  ;;  %v780_v35 = vmul.f32 %v779_v29, %v1528_v43 }
 0x142   :  { %v1087_v28 = vpop.eup %1086  ;;  %v708_v25 = vadd.f32 %v1085_v49, %v707_v44  ;;  %921 = vmatmul.f32.gmra.mxu1 %v861_v24  ;;  %vm429_vm8 = vweird.f32 %v1812_v21  ;;  %v497_v53 = vadd.f32 0.014752088, %v496_v57  ;;  %v433_v9 = vand.u32 2147483647, %v1812_v21 }
 0x143   :  { %v425_v2 = vmul.f32 %v1087_v28, %v1812_v21  ;;  %v815_v54 = vadd.f32 0.001143296, %v814_v5  ;;  %v1089_v50 = vpop.eup %1088  ;;  %v435_v1 = vand.u32 2147483648, %v1812_v21  ;;  %1090 = vrcp.f32 %v1847_v37 }
 0x144   :  { %v712_v30 = vsel %vm711_vm7, %v1085_v49, %v708_v25  ;;  %v745_v10 = vmul.f32 %v1089_v50, %v1817_v16  ;;  %vm749_vm9 = vweird.f32 %v1817_v16  ;;  %vm430_vm10 = vweird.f32 %v1087_v28 }
 0x145   :  { %v717_v60 = vsel %vm1841_vm6, %v716_v33, %v712_v30  ;;  %v426_v14 = vsub.f32 1.0, %v425_v2  ;;  %v753_v22 = vand.u32 2147483647, %v1817_v16  ;;  %v781_v34 = vadd.f32 0.4994258, %v780_v35  ;;  %vm431_vm13 = vmor %vm429_vm8, %vm430_vm10 }
 0x146   :  { %v718_v55 = vmul.f32 %v717_v60, %v1607_v63  ;;  %v746_v20 = vsub.f32 1.0, %v745_v10  ;;  %v498_v17 = vmul.f32 %v497_v53, %v1585_v39  ;;  %v816_v51 = vmul.f32 %v815_v54, %v1648_v12 }
 0x147   :  { %v427_v61 = vmul.f32 %v1087_v28, %v426_v14  ;;  %vm1865_vm11 = vcmp.eq.f32.partialorder %v433_v9, 8.507059e+37  ;;  %v755_v36 = vand.u32 2147483648, %v1817_v16  ;;  %v782_v58 = vmul.f32 %v781_v34, %v1528_v43  ;;  %v1982_v43 = vld [vmem:[#allocation15_spill] sm:$0xff] }
 0x148   :  { %v1022_v40 = vclamps-f32 %v718_v55, 1.0  ;;  %v436_v42 = vor.u32 1.1754944e-38, %v435_v1  ;;  %v747_v47 = vmul.f32 %v1089_v50, %v746_v20  ;;  %vm750_vm12 = vweird.f32 %v1089_v50 }
 0x149   :  { %v428_v63 = vadd.f32 %v1087_v28, %v427_v61  ;;  %v1091_v19 = vpop.eup %1090  ;;  %v1874_v49 = vadd.f32 1.0, %v782_v58  ;;  %v499_v27 = vadd.f32 0.112945676, %v498_v17  ;;  %v817_v31 = vadd.f32 0.014752088, %v816_v51  ;;  %vm751_vm15 = vmor %vm749_vm9, %vm750_vm12 }
 0x14a   :  { %v853_v59 = vadd.f32 1.0, %v1022_v40  ;;  %v748_v11 = vadd.f32 %v1089_v50, %v747_v47  ;;  %vm754_vm14 = vcmp.eq.f32.partialorder %v753_v22, 8.507059e+37  ;;  %v465_v52 = vmul.f32 %v1091_v19, %v1847_v37 }
 0x14b   :  { %v432_v15 = vsel %vm431_vm13, %v1087_v28, %v428_v63  ;;  %v756_v45 = vor.u32 1.1754944e-38, %v755_v36  ;;  %1092 = vrcp.f32 %v1874_v49  ;;  %v473_v48 = vand.u32 2147483647, %v1847_v37 }
 0x14c   :  { %v869_v32 = vmul.f32 %v853_v59, %v1982_v43  ;;  %v437_v56 = vsel %vm1865_vm11, %v436_v42, %v432_v15  ;;  %v752_v23 = vsel %vm751_vm15, %v1089_v50, %v748_v11  ;;  %v466_v46 = vsub.f32 1.0, %v465_v52  ;;  %v1983_v50 = vld [vmem:[#allocation16_spill] sm:$0xff]  ;;  %v1985_v42 = vld [vmem:[#allocation14_spill] sm:$0xff] }
 0x14d   :  { %v438_v21 = vmul.f32 %v437_v56, %v1620_v3  ;;  %v757_v4 = vsel %vm754_vm14, %v756_v45, %v752_v23  ;;  %v475_v44 = vand.u32 2147483648, %v1847_v37  ;;  %v500_v7 = vmul.f32 %v499_v27, %v1585_v39 }
 0x14e   :  { %945 = vmatmul.f32.gmra.mxu3 %v869_v32  ;;  %v818_v29 = vmul.f32 %v817_v31, %v1648_v12  ;;  %v758_v16 = vmul.f32 %v757_v4, %v1623_v41  ;;  %v467_v6 = vmul.f32 %v1091_v19, %v466_v46  ;;  %vm470_vm0 = vweird.f32 %v1091_v19 }
 0x14f   :  { %v1015_v24 = vclamps-f32 %v438_v21, 1.0  ;;  %v489_v3 = vmul.f32 %v1834_v26, %v1585_v39  ;;  %v807_v57 = vmul.f32 %v1836_v38, %v1648_v12  ;;  %v501_v5 = vadd.f32 0.4994258, %v500_v7 }
 0x150   :  { %v819_v28 = vadd.f32 0.112945676, %v818_v29  ;;  %v1023_v33 = vclamps-f32 %v758_v16, 1.0  ;;  %v468_v35 = vadd.f32 %v1091_v19, %v467_v6  ;;  %vm469_vm1 = vweird.f32 %v1847_v37 }
 0x151   :  { %v846_v25 = vadd.f32 1.0, %v1015_v24  ;;  %v1093_v2 = vpop.eup %1092  ;;  %vm471_vm2 = vmor %vm469_vm1, %vm470_vm0  ;;  %vm474_vm3 = vcmp.eq.f32.partialorder %v473_v48, 8.507059e+37  ;;  %v476_v53 = vor.u32 1.1754944e-38, %v475_v44  ;;  %v502_v41 = vmul.f32 %v501_v5, %v1585_v39 }
 0x152   :  { %v820_v54 = vmul.f32 %v819_v28, %v1648_v12  ;;  %v854_v30 = vadd.f32 1.0, %v1023_v33  ;;  %v472_v9 = vsel %vm471_vm2, %v1091_v19, %v468_v35  ;;  %v785_v38 = vmul.f32 %v1093_v2, %v1874_v49 }
 0x153   :  { %v862_v26 = vmul.f32 %v846_v25, %v1983_v50  ;;  %v808_v1 = vadd.f32 0.05243302, %v807_v57  ;;  %v477_v60 = vsel %vm474_vm3, %v476_v53, %v472_v9  ;;  %v503_v14 = vadd.f32 1.0, %v502_v41  ;;  %v1987_v50 = vld [vmem:[#allocation19_spill] sm:$0xff] }
 0x154   :  { %v821_v10 = vadd.f32 0.4994258, %v820_v54  ;;  %v870_v37 = vmul.f32 %v854_v30, %v1553_v18  ;;  %v478_v55 = vmul.f32 %v477_v60, %v1825_v62  ;;  %v786_v22 = vsub.f32 1.0, %v785_v38  ;;  %v1988_v30 = vld [vmem:[#allocation17_spill] sm:$0xff] }
 0x155   :  { %924 = vmatmul.f32.gmra.mxu1 %v862_v26  ;;  %v772_v34 = vadd.f32 1.1283791, %v1830_v8  ;;  %v793_v61 = vand.u32 2147483647, %v1874_v49  ;;  %v795_v20 = vand.u32 2147483648, %v1874_v49  ;;  %1094 = vrcp.f32 %v503_v14 }
 0x156   :  { %948 = vmatmul.f32.gmra.mxu3 %v870_v37  ;;  %v1016_v17 = vclamps-f32 %v478_v55, 1.0  ;;  %v787_v51 = vmul.f32 %v1093_v2, %v786_v22  ;;  %vm790_vm4 = vweird.f32 %v1093_v2  ;;  %v822_v40 = vmul.f32 %v821_v10, %v1648_v12  ;;  %v1917_v37 = vld [vmem:[%s1946_s4] ss:$0 sm:$0xff]  ;;  %v1989_v55 = vld [vmem:[#allocation18_spill] sm:$0xff]  ;;  %s1221_s4 = smov [#allocation8]  }
 0x157   :  { %v175_v36 = vmul.f32 0.5, %v1984_v13  ;;  %v490_v58 = vadd.f32 0.18741608, %v489_v3  ;;  %v809_v18 = vmul.f32 %v808_v1, %v1648_v12  ;;  %vm789_vm5 = vweird.f32 %v1874_v49  ;;  %v1986_v49 = vld [vmem:[#allocation13_spill] sm:$0xff]  ;;  %s994_s10 = sshll.u32 %s1221_s4, 4  ;;  %s995_s10 = int_to_ptr.vmem [resolvable:$true] %s994_s10 }
 0x158   :  { %v847_v62 = vadd.f32 1.0, %v1016_v17  ;;  %v788_v63 = vadd.f32 %v1093_v2, %v787_v51  ;;  %v823_v8 = vadd.f32 1.0, %v822_v40  ;;  %v773_v47 = vmul.f32 %v772_v34, %v1985_v42  ;;  %vm791_vm6 = vmor %vm789_vm5, %vm790_vm4  ;;  %v1098_v51 = vld [vmem:[#allocation2] sm:$0xff] }
 0x159   :  { %v796_v19 = vor.u32 1.1754944e-38, %v795_v20  ;;  %vm794_vm7 = vcmp.eq.f32.partialorder %v793_v61, 8.507059e+37  ;;  %v491_v15 = vmul.f32 %v490_v58, %v1585_v39  ;;  %v810_v11 = vadd.f32 0.18741608, %v809_v18  ;;  %v1099_v58 = vld [vmem:[#allocation2 + $0x40] sm:$0xff] }
 0x15a   :  { %v863_v59 = vmul.f32 %v847_v62, %v175_v36  ;;  %v792_v27 = vsel %vm791_vm6, %v1093_v2, %v788_v63  ;;  %1096 = vrcp.f32 %v823_v8  ;;  %v183_v21 = vmul.f32 0.5, %v1986_v49  ;;  %v1103_v49 = vld [vmem:[#allocation2 + $0x50] sm:$0xff] }
 0x15b   :  { %v1095_v31 = vpop.eup %1094  ;;  %v797_v52 = vsel %vm794_vm7, %v796_v19, %v792_v27  ;;  %v492_v23 = vadd.f32 1.1283791, %v491_v15  ;;  %v811_v46 = vmul.f32 %v810_v11, %v1648_v12  ;;  %v515_v48 = vand.u32 2147483648, %v503_v14  ;;  %v1102_v11 = vld [vmem:[#allocation2 + $0x48] sm:$0xff] }
 0x15c   :  { %v798_v43 = vmul.f32 %v797_v52, %v773_v47  ;;  %v505_v32 = vmul.f32 %v1095_v31, %v503_v14  ;;  %vm510_vm8 = vweird.f32 %v1095_v31  ;;  %v513_v29 = vand.u32 2147483647, %v503_v14 }
 0x15d   :  { %927 = vmatmul.f32.gmra.mxu1 %v863_v59  ;;  %vm509_vm9 = vweird.f32 %v503_v14  ;;  %v493_v6 = vmul.f32 %v492_v23, %v1561_v0  ;;  %v516_v3 = vor.u32 1.1754944e-38, %v515_v48  ;;  %v812_v5 = vadd.f32 1.1283791, %v811_v46  ;;  %v1101_v59 = vld [vmem:[#allocation2 + $0x10] sm:$0xff]  ;;  %v1104_v23 = vld [vmem:[#allocation2 + $0x18] sm:$0xff] }
 0x15e   :  { %v1024_v56 = vclamps-f32 %v798_v43, 1.0  ;;  %v506_v45 = vsub.f32 1.0, %v505_v32  ;;  %vm511_vm10 = vmor %vm509_vm9, %vm510_vm8  ;;  %vm514_vm11 = vcmp.eq.f32.partialorder %v513_v29, 8.507059e+37  ;;  %v835_v12 = vand.u32 2147483648, %v823_v8  ;;  %v1105_v29 = vld [vmem:[#allocation2 + $0x20] sm:$0xff] }
 0x15f   :  { %v833_v35 = vand.u32 2147483647, %v823_v8  ;;  %vm829_vm13 = vweird.f32 %v823_v8  ;;  %v813_v0 = vmul.f32 %v812_v5, %v1987_v50  ;;  %v176_v9 = vmul.f32 0.5, %v1988_v30 }
 0x160   :  { %v1097_v4 = vpop.eup %1096  ;;  %v855_v44 = vadd.f32 1.0, %v1024_v56  ;;  %v507_v7 = vmul.f32 %v1095_v31, %v506_v45  ;;  %v836_v54 = vor.u32 1.1754944e-38, %v835_v12  ;;  %v184_v22 = vmul.f32 0.5, %v1989_v55 }
 0x161   :  { %v825_v24 = vmul.f32 %v1097_v4, %v823_v8  ;;  %vm830_vm12 = vweird.f32 %v1097_v4  ;;  %vm834_vm15 = vcmp.eq.f32.partialorder %v833_v35, 8.507059e+37  ;;  %v1100_v8 = vld [vmem:[#allocation2 + $0x8] sm:$0xff] }
 0x162   :  { %v871_v39 = vmul.f32 %v855_v44, %v183_v21  ;;  %v508_v16 = vadd.f32 %v1095_v31, %v507_v7  ;;  %vm831_vm14 = vmor %vm829_vm13, %vm830_vm12 }
 0x163   :  { %v826_v57 = vsub.f32 1.0, %v825_v24 }
 0x164   :  { %951 = vmatmul.f32.gmra.mxu3 %v871_v39  ;;  %v512_v28 = vsel %vm511_vm10, %v1095_v31, %v508_v16  ;;  %v1106_v39 = vld [vmem:[#allocation2 + $0x58] sm:$0xff] }
 0x165   :  { %v517_v25 = vsel %vm514_vm11, %v516_v3, %v512_v28  ;;  %v827_v33 = vmul.f32 %v1097_v4, %v826_v57  ;;  %v1107_v28 = vld [vmem:[#allocation2 + $0x60] sm:$0xff] }
 0x166   :  { %v518_v2 = vmul.f32 %v517_v25, %v493_v6  ;;  %v1108_v25 = vld [vmem:[#allocation2 + $0x28] sm:$0xff] }
 0x167   :  { %v828_v53 = vadd.f32 %v1097_v4, %v827_v33 }
 0x168   :  { %v1017_v41 = vclamps-f32 %v518_v2, 1.0 }
 0x169   :  { %v832_v26 = vsel %vm831_vm14, %v1097_v4, %v828_v53 }
 0x16a   :  { %v848_v38 = vadd.f32 1.0, %v1017_v41  ;;  %v837_v1 = vsel %vm834_vm15, %v836_v54, %v832_v26  ;;  %v1109_v54 = vld [vmem:[#allocation2 + $0x30] sm:$0xff] }
 0x16b   :  { %v838_v60 = vmul.f32 %v837_v1, %v813_v0  ;;  %v1110_v0 = vld [vmem:[#allocation2 + $0x68] sm:$0xff] }
 0x16c   :  { %v864_v14 = vmul.f32 %v848_v38, %v176_v9  ;;  %v1111_v38 = vld [vmem:[#allocation2 + $0x70] sm:$0xff] }
 0x16d   :  { %v1025_v10 = vclamps-f32 %v838_v60, 1.0 }
 0x16e   :  { %930 = vmatmul.f32.gmra.mxu1 %v864_v14 }
 0x16f   :  { %v856_v34 = vadd.f32 1.0, %v1025_v10  ;;  %v1112_v10 = vld [vmem:[#allocation2 + $0x38] sm:$0xff] }
 0x171   :  { %v910_v61 = vpop.f32.mrf.mxu1  ;;  %v872_v20 = vmul.f32 %v856_v34, %v184_v22 }
 0x172   :  { %v911_v17 = vadd.f32 %v1917_v37, %v910_v61  ;;  %v1113_v61 = vld [vmem:[#allocation2 + $0x78] sm:$0xff] }
 0x173   :  { %954 = vmatmul.f32.gmra.mxu3 %v872_v20 }
 0x174   :  { %v958_v40 = vadd.f32 %v1098_v51, %v911_v17 }
 0x176   :  { %974 = vst [vmem:[#allocation8] sm:$0xff] %v958_v40 }
 0x197   :  { %v934_v13 = vpop.f32.mrf.mxu3 }
 0x198   :  { %v935_v36 = vadd.f32 %v1917_v37, %v934_v13 }
 0x19a   :  { %v966_v18 = vadd.f32 %v1099_v58, %v935_v36 }
 0x19b   :  { %v913_v62 = vpop.f32.mrf.mxu1 }
 0x19c   :  { %v914_v63 = vadd.f32 %v1917_v37, %v913_v62  ;;  %982 = vst [vmem:[#allocation8 + $0x40] sm:$0xff] %v966_v18 }
 0x19e   :  { %v959_v42 = vadd.f32 %v1100_v8, %v914_v63 }
 0x1a0   :  { %975 = vst [vmem:[#allocation8 + $0x8] sm:$0xff] %v959_v42 }
 0x1a3   :  { %v916_v47 = vpop.f32.mrf.mxu1 }
 0x1a4   :  { %v917_v19 = vadd.f32 %v1917_v37, %v916_v47 }
 0x1a5   :  { %v937_v31 = vpop.f32.mrf.mxu3 }
 0x1a6   :  { %v960_v27 = vadd.f32 %v1101_v59, %v917_v19  ;;  %v938_v15 = vadd.f32 %v1917_v37, %v937_v31 }
 0x1a8   :  { %976 = vst [vmem:[#allocation8 + $0x10] sm:$0xff] %v960_v27  ;;  %v967_v52 = vadd.f32 %v1102_v11, %v938_v15 }
 0x1aa   :  { %983 = vst [vmem:[#allocation8 + $0x48] sm:$0xff] %v967_v52 }
 0x1b1   :  { %v940_v43 = vpop.f32.mrf.mxu3 }
 0x1b2   :  { %v941_v32 = vadd.f32 %v1917_v37, %v940_v43  ;;  %v919_v56 = vpop.f32.mrf.mxu1 }
 0x1b3   :  { %v920_v45 = vadd.f32 %v1917_v37, %v919_v56 }
 0x1b4   :  { %v968_v21 = vadd.f32 %v1103_v49, %v941_v32 }
 0x1b5   :  { %v961_v46 = vadd.f32 %v1104_v23, %v920_v45 }
 0x1b6   :  { %984 = vst [vmem:[#allocation8 + $0x50] sm:$0xff] %v968_v21 }
 0x1b7   :  { %977 = vst [vmem:[#allocation8 + $0x18] sm:$0xff] %v961_v46 }
 0x1bf   :  { %v922_v48 = vpop.f32.mrf.mxu1 }
 0x1c0   :  { %v923_v4 = vadd.f32 %v1917_v37, %v922_v48  ;;  %v943_v44 = vpop.f32.mrf.mxu3 }
 0x1c1   :  { %v944_v7 = vadd.f32 %v1917_v37, %v943_v44 }
 0x1c2   :  { %v962_v24 = vadd.f32 %v1105_v29, %v923_v4 }
 0x1c3   :  { %v969_v16 = vadd.f32 %v1106_v39, %v944_v7 }
 0x1c4   :  { %978 = vst [vmem:[#allocation8 + $0x20] sm:$0xff] %v962_v24 }
 0x1c5   :  { %985 = vst [vmem:[#allocation8 + $0x58] sm:$0xff] %v969_v16 }
 0x1d1   :  { %v946_v6 = vpop.f32.mrf.mxu3 }
 0x1d2   :  { %v925_v3 = vpop.f32.mrf.mxu1  ;;  %v947_v57 = vadd.f32 %v1917_v37, %v946_v6 }
 0x1d3   :  { %v926_v5 = vadd.f32 %v1917_v37, %v925_v3 }
 0x1d4   :  { %v970_v12 = vadd.f32 %v1107_v28, %v947_v57 }
 0x1d5   :  { %v963_v33 = vadd.f32 %v1108_v25, %v926_v5 }
 0x1d6   :  { %986 = vst [vmem:[#allocation8 + $0x60] sm:$0xff] %v970_v12 }
 0x1d7   :  { %979 = vst [vmem:[#allocation8 + $0x28] sm:$0xff] %v963_v33 }
 0x1d9   :  { %v949_v2 = vpop.f32.mrf.mxu3 }
 0x1da   :  { %v928_v35 = vpop.f32.mrf.mxu1  ;;  %v950_v41 = vadd.f32 %v1917_v37, %v949_v2 }
 0x1db   :  { %v929_v53 = vadd.f32 %v1917_v37, %v928_v35 }
 0x1dc   :  { %v971_v26 = vadd.f32 %v1110_v0, %v950_v41 }
 0x1dd   :  { %v964_v50 = vadd.f32 %v1109_v54, %v929_v53 }
 0x1de   :  { %987 = vst [vmem:[#allocation8 + $0x68] sm:$0xff] %v971_v26 }
 0x1df   :  { %980 = vst [vmem:[#allocation8 + $0x30] sm:$0xff] %v964_v50 }
 0x1e7   :  { %v952_v30 = vpop.f32.mrf.mxu3 }
 0x1e8   :  { %v953_v9 = vadd.f32 %v1917_v37, %v952_v30 }
 0x1ea   :  { %v972_v1 = vadd.f32 %v1111_v38, %v953_v9 }
 0x1eb   :  { %v931_v60 = vpop.f32.mrf.mxu1 }
 0x1ec   :  { %v932_v14 = vadd.f32 %v1917_v37, %v931_v60  ;;  %988 = vst [vmem:[#allocation8 + $0x70] sm:$0xff] %v972_v1 }
 0x1ee   :  { %v965_v55 = vadd.f32 %v1112_v10, %v932_v14 }
 0x1f0   :  { %981 = vst [vmem:[#allocation8 + $0x38] sm:$0xff] %v965_v55 }
 0x1f6   :  { %v955_v22 = vpop.f32.mrf.mxu3 }
 0x1f7   :  { %v956_v34 = vadd.f32 %v1917_v37, %v955_v22 }
 0x1f9   :  { %v973_v20 = vadd.f32 %v1113_v61, %v956_v34 }
 0x1fb   :  { %989 = vst [vmem:[#allocation8 + $0x78] sm:$0xff] %v973_v20 }
 0x1fc   :  { %1002 = dma.vmem_to_hbm [thread:$0]  %s995_s10, 2048, %s997_s13, [#allocation4], %s1217_s26, %s1217_s26, %s1218_s27  }
 0x1fd   :  { %1214 = dma.done.wait [#allocation4], 2048  }
 0x1fe   :  { %1215 = vsyncadd [#allocation4], 4294965248 }
 0x1ff   :  { %1007 = vsyncpa [#allocation3], 1 }
 0x200   :  { %1008 = vsyncpa [#allocation6], 1 }
 0x201   :  { %1009 = vsyncpa [#allocation4], 1 }

</bundles_post_ra>
